<compile_context>
chip_gen: v7x
topology: tpu7x:2x2x1
jax: 0.10.0
libtpu: 0.0.40
codegen_flags: <defaults>
</compile_context>

<pallas_src>
import functools
import math

import jax
import jax.numpy as jnp
from jax.experimental import pallas as pl
from jax.experimental.pallas import tpu as pltpu

EPS_SYNC = 1e-3            # SyncBN eps (CGNet part)
EPS_BN = 1e-5              # nn.BatchNorm2d eps (deep_feature_match part)
BLOCK_M = 256              # row tile for the M = N*H*W grid axis
ACT_DTYPE = jnp.bfloat16   # activations stored bf16 in HBM; f32 accumulation in-kernel

_VMEM = pl.BlockSpec(memory_space=pltpu.MemorySpace.VMEM)


def _row_tile(m):
    return m if m <= BLOCK_M else BLOCK_M


# ----------------------------------------------------------------------------
# Pallas kernels
# ----------------------------------------------------------------------------
def _mm_ep_kernel(act, x_ref, w_ref, s_ref, b_ref, a_ref, o_ref):
    """act((x @ w) * scale + shift)  (bf16 operands, f32 accumulate, fused epilogue)."""
    z = jnp.dot(x_ref[...], w_ref[...], preferred_element_type=jnp.float32)
    z = z * s_ref[...] + b_ref[...]
    if act == "prelu":
        z = jnp.where(z >= 0.0, z, a_ref[...] * z)
    elif act == "relu":
        z = jnp.maximum(z, 0.0)
    elif act == "sigmoid":
        z = jax.nn.sigmoid(z)
    o_ref[...] = z.astype(o_ref.dtype)


def _joint_kernel(ntap, x_ref, w_ref, s_ref, b_ref, a_ref, o_ref):
    """Fused f_loc + f_sur depthwise convs + BN + PReLU (taps [0:ntap] loc, [ntap:] sur)."""
    loc = x_ref[0].astype(jnp.float32) * w_ref[0]
    for t in range(1, ntap):
        loc = loc + x_ref[t].astype(jnp.float32) * w_ref[t]
    sur = x_ref[ntap].astype(jnp.float32) * w_ref[ntap]
    for t in range(ntap + 1, 2 * ntap):
        sur = sur + x_ref[t].astype(jnp.float32) * w_ref[t]
    z = jnp.concatenate([loc, sur], axis=-1)
    z = z * s_ref[...] + b_ref[...]
    z = jnp.where(z >= 0.0, z, a_ref[...] * z)
    o_ref[...] = z.astype(o_ref.dtype)


def _tapsum_kernel(ntap, act, x_ref, w_ref, s_ref, b_ref, o_ref):
    acc = x_ref[0].astype(jnp.float32) * w_ref[0]
    for t in range(1, ntap):
        acc = acc + x_ref[t].astype(jnp.float32) * w_ref[t]
    z = acc * s_ref[...] + b_ref[...]
    if act == "relu":
        z = jnp.maximum(z, 0.0)
    o_ref[...] = z.astype(o_ref.dtype)


def _tapmax_kernel(ntap, x_ref, o_ref):
    acc = x_ref[0]
    for t in range(1, ntap):
        acc = jnp.maximum(acc, x_ref[t])
    o_ref[...] = acc


def _ssa_kernel(act, x_ref, s_ref, b_ref, a_ref, o_ref):
    z = x_ref[...].astype(jnp.float32) * s_ref[...] + b_ref[...]
    if act == "prelu":
        z = jnp.where(z >= 0.0, z, a_ref[...] * z)
    elif act == "relu":
        z = jnp.maximum(z, 0.0)
    o_ref[...] = z.astype(o_ref.dtype)


def _gate_kernel(x_ref, g_ref, o_ref):
    o_ref[...] = (x_ref[...].astype(jnp.float32) * g_ref[...]).astype(o_ref.dtype)


def _gate_skip_kernel(x_ref, g_ref, r_ref, o_ref):
    z = x_ref[...].astype(jnp.float32) * g_ref[...] + r_ref[...].astype(jnp.float32)
    o_ref[...] = z.astype(o_ref.dtype)


def _fc2_kernel(act1, act2, x_ref, w1_ref, b1_ref, a1_ref, w2_ref, b2_ref, o_ref):
    """Fused 2-layer FC: used for the SE gate and the DFM relation conv (tiny M)."""
    h = jnp.dot(x_ref[...], w1_ref[...], preferred_element_type=jnp.float32) + b1_ref[...]
    if act1 == "relu":
        h = jnp.maximum(h, 0.0)
    elif act1 == "prelu":
        h = jnp.where(h >= 0.0, h, a1_ref[...] * h)
    z = jnp.dot(h, w2_ref[...], preferred_element_type=jnp.float32) + b2_ref[...]
    if act2 == "sigmoid":
        z = jax.nn.sigmoid(z)
    elif act2 == "relu":
        z = jnp.maximum(z, 0.0)
    o_ref[...] = z


def _rowinterp_kernel(p_ref, x_ref, o_ref):
    o_ref[0] = jnp.dot(p_ref[...], x_ref[0],
                       preferred_element_type=jnp.float32).astype(o_ref.dtype)


def _bmm_kernel(a_ref, b_ref, o_ref):
    o_ref[0] = jnp.dot(a_ref[0], b_ref[0],
                       preferred_element_type=jnp.float32).astype(o_ref.dtype)


# ----------------------------------------------------------------------------
# Kernel wrappers
# ----------------------------------------------------------------------------
def matmul_ep(x, w, scale=None, shift=None, alpha=None, act="none", out_dtype=ACT_DTYPE):
    """(M, K) @ (K, N) with fused per-channel scale/shift + activation, tiled over M."""
    m, k = x.shape
    n = w.shape[1]
    if scale is None:
        scale = jnp.ones((1, n), jnp.float32)
    if shift is None:
        shift = jnp.zeros((1, n), jnp.float32)
    if alpha is None:
        alpha = jnp.zeros((1, n), jnp.float32)
    scale = jnp.asarray(scale, jnp.float32).reshape(1, n)
    shift = jnp.asarray(shift, jnp.float32).reshape(1, n)
    alpha = jnp.broadcast_to(jnp.asarray(alpha, jnp.float32).reshape(1, -1), (1, n))
    tm = _row_tile(m)
    return pl.pallas_call(
        functools.partial(_mm_ep_kernel, act),
        grid=(pl.cdiv(m, tm),),
        in_specs=[pl.BlockSpec((tm, k), lambda i: (i, 0)),
                  pl.BlockSpec((k, n), lambda i: (0, 0)),
                  pl.BlockSpec((1, n), lambda i: (0, 0)),
                  pl.BlockSpec((1, n), lambda i: (0, 0)),
                  pl.BlockSpec((1, n), lambda i: (0, 0))],
        out_specs=pl.BlockSpec((tm, n), lambda i: (i, 0)),
        out_shape=jax.ShapeDtypeStruct((m, n), out_dtype),
        compiler_params=pltpu.CompilerParams(dimension_semantics=("parallel",)),
    )(x.astype(jnp.bfloat16), w.astype(jnp.bfloat16), scale, shift, alpha)


def tapsum(taps, wt, scale, shift, act="none", out_dtype=ACT_DTYPE):
    ntap, m, c = taps.shape
    tm = _row_tile(m)
    return pl.pallas_call(
        functools.partial(_tapsum_kernel, ntap, act),
        grid=(pl.cdiv(m, tm),),
        in_specs=[pl.BlockSpec((ntap, tm, c), lambda i: (0, i, 0)),
                  pl.BlockSpec((ntap, 1, c), lambda i: (0, 0, 0)),
                  pl.BlockSpec((1, c), lambda i: (0, 0)),
                  pl.BlockSpec((1, c), lambda i: (0, 0))],
        out_specs=pl.BlockSpec((tm, c), lambda i: (i, 0)),
        out_shape=jax.ShapeDtypeStruct((m, c), out_dtype),
        compiler_params=pltpu.CompilerParams(dimension_semantics=("parallel",)),
    )(taps.astype(jnp.bfloat16), wt, scale, shift)


def joint_depthwise(x, wt, scale, shift, alpha, dilation):
    """f_loc(3x3) + f_sur(3x3 dilated) depthwise + BN + PReLU fused; x NHWC."""
    n, h, w, c = x.shape
    taps_l, ho, wo = _dw_taps(x, 3, 1, 1, 1)
    taps_s, _, _ = _dw_taps(x, 3, 1, dilation, dilation)
    t = jnp.stack(taps_l + taps_s, axis=0)          # (18, M, c) bf16
    m = n * ho * wo
    tm = _row_tile(m)
    out = pl.pallas_call(
        functools.partial(_joint_kernel, 9),
        grid=(pl.cdiv(m, tm),),
        in_specs=[pl.BlockSpec((18, tm, c), lambda i: (0, i, 0)),
                  pl.BlockSpec((18, 1, c), lambda i: (0, 0, 0)),
                  pl.BlockSpec((1, 2 * c), lambda i: (0, 0)),
                  pl.BlockSpec((1, 2 * c), lambda i: (0, 0)),
                  pl.BlockSpec((1, 2 * c), lambda i: (0, 0))],
        out_specs=pl.BlockSpec((tm, 2 * c), lambda i: (i, 0)),
        out_shape=jax.ShapeDtypeStruct((m, 2 * c), ACT_DTYPE),
        compiler_params=pltpu.CompilerParams(dimension_semantics=("parallel",)),
    )(t.astype(jnp.bfloat16), wt, scale, shift, alpha)
    return out.reshape(n, ho, wo, 2 * c)


def bn_act(x, scale, shift, alpha=None, act="prelu"):
    """Standalone BN(+PReLU) on an NHWC tensor (norm_prelu_0 / norm_prelu_1)."""
    n, h, w, c = x.shape
    m = n * h * w
    tm = _row_tile(m)
    if alpha is None:
        alpha = jnp.zeros((1, c), jnp.float32)
    out = pl.pallas_call(
        functools.partial(_ssa_kernel, act),
        grid=(pl.cdiv(m, tm),),
        in_specs=[pl.BlockSpec((tm, c), lambda i: (i, 0)),
                  pl.BlockSpec((1, c), lambda i: (0, 0)),
                  pl.BlockSpec((1, c), lambda i: (0, 0)),
                  pl.BlockSpec((1, c), lambda i: (0, 0))],
        out_specs=pl.BlockSpec((tm, c), lambda i: (i, 0)),
        out_shape=jax.ShapeDtypeStruct((m, c), ACT_DTYPE),
        compiler_params=pltpu.CompilerParams(dimension_semantics=("parallel",)),
    )(x.reshape(m, c).astype(ACT_DTYPE),
      jnp.asarray(scale, jnp.float32).reshape(1, c),
      jnp.asarray(shift, jnp.float32).reshape(1, c),
      jnp.asarray(alpha, jnp.float32).reshape(1, c))
    return out.reshape(n, h, w, c)


def se_scale(x, gate, skip=None):
    """x (N,H,W,C) * gate (N,C)  [+ skip]; gate broadcast in-kernel (never in HBM)."""
    n, h, w, c = x.shape
    hw = h * w
    tm = _row_tile(hw)
    g3 = gate.reshape(n, 1, c).astype(jnp.float32)
    x3 = x.reshape(n, hw, c).astype(ACT_DTYPE)
    specs = [pl.BlockSpec((1, tm, c), lambda b, i: (b, i, 0)),
             pl.BlockSpec((1, 1, c), lambda b, i: (b, 0, 0))]
    args = [x3, g3]
    kern = _gate_kernel
    if skip is not None:
        specs.append(pl.BlockSpec((1, tm, c), lambda b, i: (b, i, 0)))
        args.append(skip.reshape(n, hw, c).astype(ACT_DTYPE))
        kern = _gate_skip_kernel
    out = pl.pallas_call(
        kern,
        grid=(n, pl.cdiv(hw, tm)),
        in_specs=specs,
        out_specs=pl.BlockSpec((1, tm, c), lambda b, i: (b, i, 0)),
        out_shape=jax.ShapeDtypeStruct((n, hw, c), ACT_DTYPE),
        compiler_params=pltpu.CompilerParams(dimension_semantics=("parallel", "parallel")),
    )(*args)
    return out.reshape(n, h, w, c)


def fc2(x, w1, b1, alpha1, w2, b2, act1, act2):
    """Fused two-layer FC (tiny M); f32 throughout."""
    n = x.shape[0]
    n2 = w2.shape[1]
    return pl.pallas_call(
        functools.partial(_fc2_kernel, act1, act2),
        out_shape=jax.ShapeDtypeStruct((n, n2), jnp.float32),
        in_specs=[_VMEM] * 6,
        out_specs=_VMEM,
    )(x.astype(jnp.float32), w1, b1, alpha1, w2, b2)


def batched_matmul(a, b, out_dtype=ACT_DTYPE):
    """(N, M, K) @ (N, K, L) -> (N, M, L), grid over N."""
    n, m, k = a.shape
    l = b.shape[2]
    return pl.pallas_call(
        _bmm_kernel,
        grid=(n,),
        in_specs=[pl.BlockSpec((1, m, k), lambda i: (i, 0, 0)),
                  pl.BlockSpec((1, k, l), lambda i: (i, 0, 0))],
        out_specs=pl.BlockSpec((1, m, l), lambda i: (i, 0, 0)),
        out_shape=jax.ShapeDtypeStruct((n, m, l), out_dtype),
        compiler_params=pltpu.CompilerParams(dimension_semantics=("parallel",)),
    )(a.astype(jnp.bfloat16), b.astype(jnp.bfloat16))


def _rowinterp(x3, p):
    """x3 (N, S, L) -> (N, 2S, L) with interpolation matrix p (2S, S)."""
    n, s, l = x3.shape
    ds = p.shape[0]
    return pl.pallas_call(
        _rowinterp_kernel,
        grid=(n,),
        in_specs=[pl.BlockSpec((ds, s), lambda b: (0, 0)),
                  pl.BlockSpec((1, s, l), lambda b: (b, 0, 0))],
        out_specs=pl.BlockSpec((1, ds, l), lambda b: (b, 0, 0)),
        out_shape=jax.ShapeDtypeStruct((n, ds, l), ACT_DTYPE),
        compiler_params=pltpu.CompilerParams(dimension_semantics=("parallel",)),
    )(p.astype(jnp.bfloat16), x3.astype(ACT_DTYPE))


# ----------------------------------------------------------------------------
# Layout / conv helpers (NHWC)
# ----------------------------------------------------------------------------
def _dw_taps(x, k, stride, padding, dilation):
    """Shifted windows of a (possibly dilated/strided) kxk conv, each as (M, C)."""
    n, h, w, c = x.shape
    xp = jnp.pad(x, ((0, 0), (padding, padding), (padding, padding), (0, 0)))
    ho = (h + 2 * padding - dilation * (k - 1) - 1) // stride + 1
    wo = (w + 2 * padding - dilation * (k - 1) - 1) // stride + 1
    taps = []
    for ki in range(k):
        for kj in range(k):
            taps.append(
                xp[:, ki * dilation: ki * dilation + (ho - 1) * stride + 1: stride,
                      kj * dilation: kj * dilation + (wo - 1) * stride + 1: stride, :]
                .reshape(n * ho * wo, c))
    return taps, ho, wo


def conv_bn_act(x, cm, stride=1, act="prelu"):
    """ConvModule: conv(kxk) + BN + PReLU with BN folded into the matmul epilogue."""
    n, h, w, cin = x.shape
    k = cm["k"]
    cout = cm["wmat"].shape[1]
    if k == 1 and stride == 1:
        y = matmul_ep(x.reshape(-1, cin), cm["wmat"], cm["scale"], cm["shift"],
                      cm["alpha"], act=act)
        return y.reshape(n, h, w, cout)
    pad = (k - 1) // 2
    taps, ho, wo = _dw_taps(x, k, stride, pad, 1)
    patches = jnp.concatenate(taps, axis=-1)                # (M, k*k*cin), (ki,kj,cin) order
    y = matmul_ep(patches, cm["wmat"], cm["scale"], cm["shift"], cm["alpha"], act=act)
    return y.reshape(n, ho, wo, cout)


def maxpool2x2(x):
    n, h, w, c = x.shape
    taps = [x[:, i::2, j::2, :].reshape(-1, c) for i in (0, 1) for j in (0, 1)]
    t = jnp.stack(taps, axis=0).astype(ACT_DTYPE)
    m = n * (h // 2) * (w // 2)
    tm = _row_tile(m)
    out = pl.pallas_call(
        functools.partial(_tapmax_kernel, 4),
        grid=(pl.cdiv(m, tm),),
        in_specs=[pl.BlockSpec((4, tm, c), lambda i: (0, i, 0))],
        out_specs=pl.BlockSpec((tm, c), lambda i: (i, 0)),
        out_shape=jax.ShapeDtypeStruct((m, c), ACT_DTYPE),
        compiler_params=pltpu.CompilerParams(dimension_semantics=("parallel",)),
    )(t)
    return out.reshape(n, h // 2, w // 2, c)


def avgpool3x3s2(x):
    """nn.AvgPool2d(3, stride=2, padding=1) with count_include_pad=True."""
    n, h, w, c = x.shape
    taps, ho, wo = _dw_taps(x, 3, 2, 1, 1)
    t = jnp.stack(taps, axis=0)
    wt = jnp.full((9, 1, c), 1.0 / 9.0, jnp.float32)
    y = tapsum(t, wt, jnp.ones((1, c), jnp.float32), jnp.zeros((1, c), jnp.float32))
    return y.reshape(n, ho, wo, c)


def _interp_matrix(src, dst):
    if src == 1:
        return jnp.ones((dst, 1), jnp.float32)
    pos = jnp.arange(dst, dtype=jnp.float32) * (src - 1) / (dst - 1)
    lo = jnp.clip(jnp.floor(pos).astype(jnp.int32), 0, src - 2)
    frac = pos - lo.astype(jnp.float32)
    m = jnp.zeros((dst, src), jnp.float32)
    m = m.at[jnp.arange(dst), lo].add(1.0 - frac)
    m = m.at[jnp.arange(dst), lo + 1].add(frac)
    return m


def bilinear_up2(x):
    """nn.Upsample(scale_factor=2, mode='bilinear', align_corners=True) in NHWC."""
    n, h, w, c = x.shape
    y = _rowinterp(x.reshape(n, h, w * c), _interp_matrix(h, 2 * h))
    y = jnp.swapaxes(y.reshape(n, 2 * h, w, c), 1, 2)                 # (n, w, 2h, c)
    y = _rowinterp(y.reshape(n, w, 2 * h * c), _interp_matrix(w, 2 * w))
    return jnp.swapaxes(y.reshape(n, 2 * w, 2 * h, c), 1, 2)          # (n, 2h, 2w, c)


# ----------------------------------------------------------------------------
# Parameter construction (deterministic, synthetic; weights pre-folded/pre-reshaped)
# ----------------------------------------------------------------------------
class _Keys:
    def __init__(self, seed):
        self._key = jax.random.PRNGKey(seed)

    def __call__(self):
        self._key, k = jax.random.split(self._key)
        return k


def _conv_w(kg, cout, cin, kh, kw):
    std = math.sqrt(2.0 / (cout * kh * kw))      # kaiming_normal_, mode='fan_out'
    return std * jax.random.normal(kg(), (cout, cin, kh, kw), jnp.float32)


def _bn_scale_shift(c, eps):
    # eval-mode BN with gamma=1, beta=0, running_mean=0, running_var=1
    return (jnp.full((1, c), 1.0 / math.sqrt(1.0 + eps), jnp.float32),
            jnp.zeros((1, c), jnp.float32))


def _prelu(c):
    return jnp.full((1, c), 0.25, jnp.float32)


def _wmat(w):
    cout, cin, kh, kw = w.shape
    return jnp.transpose(w, (2, 3, 1, 0)).reshape(kh * kw * cin, cout).astype(jnp.bfloat16)


def _dwmat(w):
    # depthwise weight (C, 1, kh, kw) -> tap weights (kh*kw, 1, C) f32
    c, _, kh, kw = w.shape
    return jnp.transpose(w[:, 0], (1, 2, 0)).reshape(kh * kw, 1, c)


def make_convmodule(kg, cin, cout, k):
    scale, shift = _bn_scale_shift(cout, EPS_SYNC)
    return {"k": k, "wmat": _wmat(_conv_w(kg, cout, cin, k, k)),
            "scale": scale, "shift": shift, "alpha": _prelu(cout)}


def make_cgb(kg, cin, cout, downsample, dilation=2, reduction=8):
    ch = cout if downsample else cout // 2
    k = 3 if downsample else 1
    jscale, jshift = _bn_scale_shift(2 * ch, EPS_SYNC)
    p = {"downsample": downsample, "dilation": dilation,
         "conv1x1": make_convmodule(kg, cin, ch, k),
         "wjoint": jnp.concatenate([_dwmat(_conv_w(kg, ch, 1, 3, 3)),
                                    _dwmat(_conv_w(kg, ch, 1, 3, 3))], axis=0),
         "joint_scale": jscale, "joint_shift": jshift, "joint_alpha": _prelu(2 * ch),
         "fc1_w": 0.1 * jax.random.normal(kg(), (cout, cout // reduction), jnp.float32),
         "fc1_b": jnp.zeros((1, cout // reduction), jnp.float32),
         "fc_zero": jnp.zeros((1, cout // reduction), jnp.float32),
         "fc2_w": 0.1 * jax.random.normal(kg(), (cout // reduction, cout), jnp.float32),
         "fc2_b": jnp.zeros((1, cout), jnp.float32)}
    if downsample:
        p["bneck_wmat"] = _wmat(_conv_w(kg, cout, 2 * ch, 1, 1))
    return p


def make_dfm(kg, in_ch, s):
    gw = _conv_w(kg, in_ch, 2, 3, 3)
    gb = jnp.zeros((in_ch,), jnp.float32)
    s1, sh1 = _bn_scale_shift(in_ch, EPS_BN)
    w2 = _conv_w(kg, 2, in_ch, 1, 1)
    b2 = jnp.zeros((2,), jnp.float32)
    s2, sh2 = _bn_scale_shift(2, EPS_BN)
    rw1 = _conv_w(kg, s, 2, s, s)
    rw2 = _conv_w(kg, s * s, s, 1, 1)
    return {"s": s,
            "gwt": jnp.concatenate([_dwmat(gw[:, 0:1]), _dwmat(gw[:, 1:2])], axis=0),
            "g_scale": s1, "g_shift": gb.reshape(1, -1) * s1 + sh1,
            "w2mat": _wmat(w2),
            "bn2_scale": s2, "bn2_shift": b2.reshape(1, -1) * s2 + sh2,
            "rw1": jnp.transpose(rw1, (2, 3, 1, 0)).reshape(s * s * 2, s),
            "rb1": jnp.zeros((1, s), jnp.float32),
            "ralpha": jnp.full((1, s), 0.25, jnp.float32),
            "rw2": jnp.transpose(rw2.reshape(s * s, s)),
            "rb2": jnp.zeros((1, s * s), jnp.float32)}


def make_params(seed, in_ch, size):
    kg = _Keys(seed)
    n1 = 32
    filters = [n1, n1 * 2, n1 * 4, n1 * 8, n1 * 16]
    params = {}
    stem = []
    cur = in_ch
    for _ in range(3):
        stem.append(make_convmodule(kg, cur, 32, 3))
        cur = 32
    params["stem"] = stem
    cur += in_ch                                            # 38
    s0, b0 = _bn_scale_shift(cur, EPS_SYNC)
    params["np0"] = (s0, b0, _prelu(cur))
    # NOTE: torch hardcodes deep_feature_match(35, 128) for 512x512 inputs; the spatial
    # argument is the H/4 feature size, so we instantiate it with size // 4.
    params["dfm"] = make_dfm(kg, 35, size // 4)
    params["level1"] = [make_cgb(kg, cur if i == 0 else 32, 32, downsample=(i == 0))
                        for i in range(3)]
    cur = 2 * 32 + in_ch                                    # 70
    s1, b1 = _bn_scale_shift(cur, EPS_SYNC)
    params["np1"] = (s1, b1, _prelu(cur))

    def cg(cin, cout):
        return make_cgb(kg, cin, cout, downsample=False)

    params["conv0_0"] = cg(cur // 2, filters[0])
    params["conv1_0"] = cg(filters[0], filters[1])
    params["conv2_0"] = cg(filters[1], filters[2])
    params["conv3_0"] = cg(filters[2], filters[3])
    params["conv4_0"] = cg(filters[3], filters[4])
    params["conv0_1"] = cg(filters[0] * 2 + filters[1], filters[0])
    params["conv1_1"] = cg(filters[1] * 2 + filters[2], filters[1])
    params["conv2_1"] = cg(filters[2] * 2 + filters[3], filters[2])
    params["conv3_1"] = cg(filters[3] * 2 + filters[4], filters[3])
    params["conv0_2"] = cg(filters[0] * 3 + filters[1], filters[0])
    params["conv1_2"] = cg(filters[1] * 3 + filters[2], filters[1])
    params["conv2_2"] = cg(filters[2] * 3 + filters[3], filters[2])
    params["conv0_3"] = cg(filters[0] * 4 + filters[1], filters[0])
    params["conv1_3"] = cg(filters[1] * 4 + filters[2], filters[1])
    params["conv0_4"] = cg(filters[0] * 5 + filters[1], filters[0])
    return params


# ----------------------------------------------------------------------------
# Module forwards
# ----------------------------------------------------------------------------
def cgb_forward(x, p, skip_connect):
    ds = p["downsample"]
    out = conv_bn_act(x, p["conv1x1"], stride=2 if ds else 1, act="prelu")
    joi = joint_depthwise(out, p["wjoint"], p["joint_scale"], p["joint_shift"],
                          p["joint_alpha"], p["dilation"])
    if ds:
        n, h, w, c = joi.shape
        joi = matmul_ep(joi.reshape(-1, c), p["bneck_wmat"]).reshape(n, h, w, -1)
    # GlobalContextExtractor (squeeze-excite); gate stays a small (N, C) vector.
    n, h, w, c = joi.shape
    pooled = jnp.mean(joi.astype(jnp.float32).reshape(n, h * w, c), axis=1)
    gate = fc2(pooled, p["fc1_w"], p["fc1_b"], p["fc_zero"], p["fc2_w"], p["fc2_b"],
               act1="relu", act2="sigmoid")
    skip = x if (skip_connect and not ds) else None
    return se_scale(joi, gate, skip=skip)


def dfm_forward(xA, xB, p):
    n, h, w, c = xA.shape                       # c == 35, h == w == p["s"]
    s = p["s"]
    # ChannelShuffle(2) + Conv2d(2c, c, 3, groups=c) decomposes into two depthwise
    # passes (one per pair member) summed; fused with conv bias + BN1 + ReLU.
    taps_a, _, _ = _dw_taps(xA, 3, 1, 1, 1)
    taps_b, _, _ = _dw_taps(xB, 3, 1, 1, 1)
    t = jnp.stack(taps_a + taps_b, axis=0)
    y = tapsum(t, p["gwt"], p["g_scale"], p["g_shift"], act="relu")
    y = y.reshape(n, h, w, c)
    # Conv2d(c, 2, 1) + BN2 + ReLU
    y = matmul_ep(y.reshape(-1, c), p["w2mat"], p["bn2_scale"], p["bn2_shift"],
                  act="relu", out_dtype=jnp.float32).reshape(n, h * w * 2)
    # relation_conv: Conv2d(2, s, kernel=s) + PReLU + Conv2d(s, s*s, 1), fused 2-layer FC
    T = fc2(y, p["rw1"], p["rb1"], p["ralpha"], p["rw2"], p["rb2"],
            act1="prelu", act2="none").reshape(n, s, s)
    # torch.matmul(xA, T): contract xA's W axis with the rows of T (batched over N)
    a = jnp.swapaxes(xA, 2, 3).reshape(n, h * c, w)
    o = batched_matmul(a, T)                                   # (N, H*C, S)
    return jnp.swapaxes(o.reshape(n, h, c, s), 2, 3)           # (N, H, S, C)


def siamese_cgnet_dfm_forward(params, xA, xB):
    # xA, xB NCHW f32 (torch layout); single boundary transpose to NHWC bf16.
    x = jnp.concatenate([xA, xB], axis=1)
    x = jnp.transpose(x, (0, 2, 3, 1)).astype(ACT_DTYPE)
    inp_2x = avgpool3x3s2(x)
    inp_4x = avgpool3x3s2(inp_2x)
    for i, cm in enumerate(params["stem"]):
        x = conv_bn_act(x, cm, stride=2 if i == 0 else 1, act="prelu")
    x = jnp.concatenate([x, inp_2x], axis=-1)
    x = bn_act(x, *params["np0"])
    out0 = x
    down1 = None
    for i, p in enumerate(params["level1"]):
        x = cgb_forward(x, p, skip_connect=True)
        if i == 0:
            down1 = x
    x = jnp.concatenate([x, down1, inp_4x], axis=-1)
    x = bn_act(x, *params["np1"])
    out1 = x

    half = x.shape[-1] // 2
    xa = x[..., :half]
    xb = x[..., :half]        # matches the reference: BOTH branches take the first half
    xa = dfm_forward(xa, xb, params["dfm"])

    cg = lambda name, z: cgb_forward(z, params[name], skip_connect=False)
    up2 = bilinear_up2
    cat = lambda *ts: jnp.concatenate(ts, axis=-1)
    x0_0a = cg("conv0_0", xa)
    x1_0a = cg("conv1_0", maxpool2x2(x0_0a))
    x2_0a = cg("conv2_0", maxpool2x2(x1_0a))
    x3_0a = cg("conv3_0", maxpool2x2(x2_0a))
    x0_0b = cg("conv0_0", xb)
    x1_0b = cg("conv1_0", maxpool2x2(x0_0b))
    x2_0b = cg("conv2_0", maxpool2x2(x1_0b))
    x3_0b = cg("conv3_0", maxpool2x2(x2_0b))
    x4_0b = cg("conv4_0", maxpool2x2(x3_0b))
    x0_1 = cg("conv0_1", cat(x0_0a, x0_0b, up2(x1_0b)))
    x1_1 = cg("conv1_1", cat(x1_0a, x1_0b, up2(x2_0b)))
    x0_2 = cg("conv0_2", cat(x0_0a, x0_0b, x0_1, up2(x1_1)))
    x2_1 = cg("conv2_1", cat(x2_0a, x2_0b, up2(x3_0b)))
    x1_2 = cg("conv1_2", cat(x1_0a, x1_0b, x1_1, up2(x2_1)))
    x0_3 = cg("conv0_3", cat(x0_0a, x0_0b, x0_1, x0_2, up2(x1_2)))
    x3_1 = cg("conv3_1", cat(x3_0a, x3_0b, up2(x4_0b)))
    x2_2 = cg("conv2_2", cat(x2_0a, x2_0b, x2_1, up2(x3_1)))
    x1_3 = cg("conv1_3", cat(x1_0a, x1_0b, x1_1, x1_2, up2(x2_2)))
    x0_4 = cg("conv0_4", cat(x0_0a, x0_0b, x0_1, x0_2, x0_3, up2(x1_3)))

    to_nchw = lambda t: jnp.transpose(t, (0, 3, 1, 2)).astype(jnp.float32)
    return [to_nchw(out0), to_nchw(out1),
            to_nchw(jnp.concatenate([x0_1, x0_2, x0_3, x0_4], axis=-1))]


# ----------------------------------------------------------------------------
if __name__ == "__main__":
    # smallest input compatible with the 4 nested pooling levels of the UNet++ part
    B, IN_CH, H, W = 1, 6, 64, 64
    key = jax.random.PRNGKey(0)
    kA, kB = jax.random.split(key)
    xA = jax.random.normal(kA, (B, IN_CH // 2, H, W), jnp.float32)
    xB = jax.random.normal(kB, (B, IN_CH // 2, H, W), jnp.float32)

    params = make_params(0, IN_CH, H)
    outs = siamese_cgnet_dfm_forward(params, xA, xB)
    outs = jax.block_until_ready(outs)

    assert outs[0].shape == (B, 38, H // 2, W // 2)
    assert outs[1].shape == (B, 70, H // 4, W // 4)
    assert outs[2].shape == (B, 128, H // 4, W // 4)
    assert all(bool(jnp.isfinite(o).all()) for o in outs)
    print("KERNEL_OK")
</pallas_src>

<mosaic_0001>
module attributes {stable_mosaic.version = 11 : i64} {
  func.func @_tapsum_kernel(%arg0: i32, %arg1: memref<9x256x6xbf16, #tpu.memory_space<vmem>>, %arg2: memref<9x1x6xf32, #tpu.memory_space<vmem>>, %arg3: memref<1x6xf32, #tpu.memory_space<vmem>>, %arg4: memref<1x6xf32, #tpu.memory_space<vmem>>, %arg5: memref<256x6xbf16, #tpu.memory_space<vmem>>) attributes {dimension_semantics = [#tpu.dimension_semantics<parallel>], iteration_bounds = array<i64: 4>, scalar_prefetch = 0 : i64, scratch_operands = 0 : i64, tpu.core_type = #tpu.core_type<tc>, window_params = [{transform_indices = @transform_0, window_bounds = array<i64: 9, 256, 6>}, {pipeline_mode = #tpu.pipeline_mode<synchronous>, transform_indices = @transform_1, window_bounds = array<i64: 9, 1, 6>}, {pipeline_mode = #tpu.pipeline_mode<synchronous>, transform_indices = @transform_2, window_bounds = array<i64: 1, 6>}, {pipeline_mode = #tpu.pipeline_mode<synchronous>, transform_indices = @transform_3, window_bounds = array<i64: 1, 6>}, {transform_indices = @transform_4, window_bounds = array<i64: 256, 6>}]} {
    %c0 = arith.constant 0 : index
    %c0_0 = arith.constant 0 : index
    %c0_1 = arith.constant 0 : index
    %0 = vector.load %arg1[%c0, %c0_0, %c0_1] : memref<9x256x6xbf16, #tpu.memory_space<vmem>>, vector<1x256x6xbf16>
    %1 = vector.shape_cast %0 : vector<1x256x6xbf16> to vector<256x6xbf16>
    %2 = arith.extf %1 : vector<256x6xbf16> to vector<256x6xf32>
    %c0_2 = arith.constant 0 : index
    %c0_3 = arith.constant 0 : index
    %c0_4 = arith.constant 0 : index
    %3 = vector.load %arg2[%c0_2, %c0_3, %c0_4] : memref<9x1x6xf32, #tpu.memory_space<vmem>>, vector<1x1x6xf32>
    %4 = vector.shape_cast %3 : vector<1x1x6xf32> to vector<1x6xf32>
    %5 = vector.broadcast %4 : vector<1x6xf32> to vector<256x6xf32>
    %6 = arith.mulf %2, %5 : vector<256x6xf32>
    %c1 = arith.constant 1 : index
    %c0_5 = arith.constant 0 : index
    %c0_6 = arith.constant 0 : index
    %7 = vector.load %arg1[%c1, %c0_5, %c0_6] : memref<9x256x6xbf16, #tpu.memory_space<vmem>>, vector<1x256x6xbf16>
    %8 = vector.shape_cast %7 : vector<1x256x6xbf16> to vector<256x6xbf16>
    %9 = arith.extf %8 : vector<256x6xbf16> to vector<256x6xf32>
    %c1_7 = arith.constant 1 : index
    %c0_8 = arith.constant 0 : index
    %c0_9 = arith.constant 0 : index
    %10 = vector.load %arg2[%c1_7, %c0_8, %c0_9] : memref<9x1x6xf32, #tpu.memory_space<vmem>>, vector<1x1x6xf32>
    %11 = vector.shape_cast %10 : vector<1x1x6xf32> to vector<1x6xf32>
    %12 = vector.broadcast %11 : vector<1x6xf32> to vector<256x6xf32>
    %13 = arith.mulf %9, %12 : vector<256x6xf32>
    %14 = arith.addf %6, %13 : vector<256x6xf32>
    %c2 = arith.constant 2 : index
    %c0_10 = arith.constant 0 : index
    %c0_11 = arith.constant 0 : index
    %15 = vector.load %arg1[%c2, %c0_10, %c0_11] : memref<9x256x6xbf16, #tpu.memory_space<vmem>>, vector<1x256x6xbf16>
    %16 = vector.shape_cast %15 : vector<1x256x6xbf16> to vector<256x6xbf16>
    %17 = arith.extf %16 : vector<256x6xbf16> to vector<256x6xf32>
    %c2_12 = arith.constant 2 : index
    %c0_13 = arith.constant 0 : index
    %c0_14 = arith.constant 0 : index
    %18 = vector.load %arg2[%c2_12, %c0_13, %c0_14] : memref<9x1x6xf32, #tpu.memory_space<vmem>>, vector<1x1x6xf32>
    %19 = vector.shape_cast %18 : vector<1x1x6xf32> to vector<1x6xf32>
    %20 = vector.broadcast %19 : vector<1x6xf32> to vector<256x6xf32>
    %21 = arith.mulf %17, %20 : vector<256x6xf32>
    %22 = arith.addf %14, %21 : vector<256x6xf32>
    %c3 = arith.constant 3 : index
    %c0_15 = arith.constant 0 : index
    %c0_16 = arith.constant 0 : index
    %23 = vector.load %arg1[%c3, %c0_15, %c0_16] : memref<9x256x6xbf16, #tpu.memory_space<vmem>>, vector<1x256x6xbf16>
    %24 = vector.shape_cast %23 : vector<1x256x6xbf16> to vector<256x6xbf16>
    %25 = arith.extf %24 : vector<256x6xbf16> to vector<256x6xf32>
    %c3_17 = arith.constant 3 : index
    %c0_18 = arith.constant 0 : index
    %c0_19 = arith.constant 0 : index
    %26 = vector.load %arg2[%c3_17, %c0_18, %c0_19] : memref<9x1x6xf32, #tpu.memory_space<vmem>>, vector<1x1x6xf32>
    %27 = vector.shape_cast %26 : vector<1x1x6xf32> to vector<1x6xf32>
    %28 = vector.broadcast %27 : vector<1x6xf32> to vector<256x6xf32>
    %29 = arith.mulf %25, %28 : vector<256x6xf32>
    %30 = arith.addf %22, %29 : vector<256x6xf32>
    %c4 = arith.constant 4 : index
    %c0_20 = arith.constant 0 : index
    %c0_21 = arith.constant 0 : index
    %31 = vector.load %arg1[%c4, %c0_20, %c0_21] : memref<9x256x6xbf16, #tpu.memory_space<vmem>>, vector<1x256x6xbf16>
    %32 = vector.shape_cast %31 : vector<1x256x6xbf16> to vector<256x6xbf16>
    %33 = arith.extf %32 : vector<256x6xbf16> to vector<256x6xf32>
    %c4_22 = arith.constant 4 : index
    %c0_23 = arith.constant 0 : index
    %c0_24 = arith.constant 0 : index
    %34 = vector.load %arg2[%c4_22, %c0_23, %c0_24] : memref<9x1x6xf32, #tpu.memory_space<vmem>>, vector<1x1x6xf32>
    %35 = vector.shape_cast %34 : vector<1x1x6xf32> to vector<1x6xf32>
    %36 = vector.broadcast %35 : vector<1x6xf32> to vector<256x6xf32>
    %37 = arith.mulf %33, %36 : vector<256x6xf32>
    %38 = arith.addf %30, %37 : vector<256x6xf32>
    %c5 = arith.constant 5 : index
    %c0_25 = arith.constant 0 : index
    %c0_26 = arith.constant 0 : index
    %39 = vector.load %arg1[%c5, %c0_25, %c0_26] : memref<9x256x6xbf16, #tpu.memory_space<vmem>>, vector<1x256x6xbf16>
    %40 = vector.shape_cast %39 : vector<1x256x6xbf16> to vector<256x6xbf16>
    %41 = arith.extf %40 : vector<256x6xbf16> to vector<256x6xf32>
    %c5_27 = arith.constant 5 : index
    %c0_28 = arith.constant 0 : index
    %c0_29 = arith.constant 0 : index
    %42 = vector.load %arg2[%c5_27, %c0_28, %c0_29] : memref<9x1x6xf32, #tpu.memory_space<vmem>>, vector<1x1x6xf32>
    %43 = vector.shape_cast %42 : vector<1x1x6xf32> to vector<1x6xf32>
    %44 = vector.broadcast %43 : vector<1x6xf32> to vector<256x6xf32>
    %45 = arith.mulf %41, %44 : vector<256x6xf32>
    %46 = arith.addf %38, %45 : vector<256x6xf32>
    %c6 = arith.constant 6 : index
    %c0_30 = arith.constant 0 : index
    %c0_31 = arith.constant 0 : index
    %47 = vector.load %arg1[%c6, %c0_30, %c0_31] : memref<9x256x6xbf16, #tpu.memory_space<vmem>>, vector<1x256x6xbf16>
    %48 = vector.shape_cast %47 : vector<1x256x6xbf16> to vector<256x6xbf16>
    %49 = arith.extf %48 : vector<256x6xbf16> to vector<256x6xf32>
    %c6_32 = arith.constant 6 : index
    %c0_33 = arith.constant 0 : index
    %c0_34 = arith.constant 0 : index
    %50 = vector.load %arg2[%c6_32, %c0_33, %c0_34] : memref<9x1x6xf32, #tpu.memory_space<vmem>>, vector<1x1x6xf32>
    %51 = vector.shape_cast %50 : vector<1x1x6xf32> to vector<1x6xf32>
    %52 = vector.broadcast %51 : vector<1x6xf32> to vector<256x6xf32>
    %53 = arith.mulf %49, %52 : vector<256x6xf32>
    %54 = arith.addf %46, %53 : vector<256x6xf32>
    %c7 = arith.constant 7 : index
    %c0_35 = arith.constant 0 : index
    %c0_36 = arith.constant 0 : index
    %55 = vector.load %arg1[%c7, %c0_35, %c0_36] : memref<9x256x6xbf16, #tpu.memory_space<vmem>>, vector<1x256x6xbf16>
    %56 = vector.shape_cast %55 : vector<1x256x6xbf16> to vector<256x6xbf16>
    %57 = arith.extf %56 : vector<256x6xbf16> to vector<256x6xf32>
    %c7_37 = arith.constant 7 : index
    %c0_38 = arith.constant 0 : index
    %c0_39 = arith.constant 0 : index
    %58 = vector.load %arg2[%c7_37, %c0_38, %c0_39] : memref<9x1x6xf32, #tpu.memory_space<vmem>>, vector<1x1x6xf32>
    %59 = vector.shape_cast %58 : vector<1x1x6xf32> to vector<1x6xf32>
    %60 = vector.broadcast %59 : vector<1x6xf32> to vector<256x6xf32>
    %61 = arith.mulf %57, %60 : vector<256x6xf32>
    %62 = arith.addf %54, %61 : vector<256x6xf32>
    %c8 = arith.constant 8 : index
    %c0_40 = arith.constant 0 : index
    %c0_41 = arith.constant 0 : index
    %63 = vector.load %arg1[%c8, %c0_40, %c0_41] : memref<9x256x6xbf16, #tpu.memory_space<vmem>>, vector<1x256x6xbf16>
    %64 = vector.shape_cast %63 : vector<1x256x6xbf16> to vector<256x6xbf16>
    %65 = arith.extf %64 : vector<256x6xbf16> to vector<256x6xf32>
    %c8_42 = arith.constant 8 : index
    %c0_43 = arith.constant 0 : index
    %c0_44 = arith.constant 0 : index
    %66 = vector.load %arg2[%c8_42, %c0_43, %c0_44] : memref<9x1x6xf32, #tpu.memory_space<vmem>>, vector<1x1x6xf32>
    %67 = vector.shape_cast %66 : vector<1x1x6xf32> to vector<1x6xf32>
    %68 = vector.broadcast %67 : vector<1x6xf32> to vector<256x6xf32>
    %69 = arith.mulf %65, %68 : vector<256x6xf32>
    %70 = arith.addf %62, %69 : vector<256x6xf32>
    %c0_45 = arith.constant 0 : index
    %c0_46 = arith.constant 0 : index
    %71 = vector.load %arg3[%c0_45, %c0_46] : memref<1x6xf32, #tpu.memory_space<vmem>>, vector<1x6xf32>
    %72 = vector.broadcast %71 : vector<1x6xf32> to vector<256x6xf32>
    %73 = arith.mulf %70, %72 : vector<256x6xf32>
    %c0_47 = arith.constant 0 : index
    %c0_48 = arith.constant 0 : index
    %74 = vector.load %arg4[%c0_47, %c0_48] : memref<1x6xf32, #tpu.memory_space<vmem>>, vector<1x6xf32>
    %75 = vector.broadcast %74 : vector<1x6xf32> to vector<256x6xf32>
    %76 = arith.addf %73, %75 : vector<256x6xf32>
    %77 = arith.truncf %76 : vector<256x6xf32> to vector<256x6xbf16>
    %c0_49 = arith.constant 0 : index
    %c0_50 = arith.constant 0 : index
    %78 = vector.load %arg5[%c0_49, %c0_50] : memref<256x6xbf16, #tpu.memory_space<vmem>>, vector<256x6xbf16>
    tpu.vector_store %arg5[%c0_49, %c0_50], %77 {strides = array<i32>} : memref<256x6xbf16, #tpu.memory_space<vmem>>, vector<256x6xbf16>,
    return
  }
  func.func @transform_0(%arg0: i32) -> (i32, i32, i32) {
    %c0_i32 = arith.constant 0 : i32
    %c0_i32_0 = arith.constant 0 : i32
    %c0_i32_1 = arith.constant 0 : i32
    return %c0_i32, %arg0, %c0_i32_0 : i32, i32, i32
  }
  func.func @transform_1(%arg0: i32) -> (i32, i32, i32) {
    %c0_i32 = arith.constant 0 : i32
    %c0_i32_0 = arith.constant 0 : i32
    %c0_i32_1 = arith.constant 0 : i32
    %c0_i32_2 = arith.constant 0 : i32
    return %c0_i32, %c0_i32_0, %c0_i32_1 : i32, i32, i32
  }
  func.func @transform_2(%arg0: i32) -> (i32, i32) {
    %c0_i32 = arith.constant 0 : i32
    %c0_i32_0 = arith.constant 0 : i32
    %c0_i32_1 = arith.constant 0 : i32
    return %c0_i32, %c0_i32_0 : i32, i32
  }
  func.func @transform_3(%arg0: i32) -> (i32, i32) {
    %c0_i32 = arith.constant 0 : i32
    %c0_i32_0 = arith.constant 0 : i32
    %c0_i32_1 = arith.constant 0 : i32
    return %c0_i32, %c0_i32_0 : i32, i32
  }
  func.func @transform_4(%arg0: i32) -> (i32, i32) {
    %c0_i32 = arith.constant 0 : i32
    %c0_i32_0 = arith.constant 0 : i32
    return %arg0, %c0_i32 : i32, i32
  }
}

</mosaic_0001>

<bundles_post_ra>
// kernel: tpu_custom_call.1
= control target key start
LH: loop header
LB: loop body
LE: loop exit
PB: predicated region body
PF: predicated region fallthrough
CT: control target
= control target key end

     0   :  { %s4055_s15 = smov 0   ;;  %s4057_s16 = smov 0   ;;  %s5319_s0 = inlined_call_operand.vmem [shape: bf16[9,1024,6], index: 0, kind: input, shape index: {}]   ;;  %s5320_s1 = inlined_call_operand.vmem [shape: f32[9,1,6], index: 1, kind: input, shape index: {}]   ;;  %s5321_s2 = inlined_call_operand.vmem [shape: f32[1,6], index: 2, kind: input, shape index: {}]   ;;  %s5322_s3 = inlined_call_operand.vmem [shape: f32[1,6], index: 3, kind: input, shape index: {}]   ;;  %s5323_s4 = inlined_call_operand.vmem [shape: bf16[1024,6], index: 4, kind: output, shape index: {}]  }
   0x1   :  { %s4059_s17 = smov 0  }
   0x2 LB: > { %s2890_s18 = sadd.s32 4294967295, %s4028_s17   ;;  %s4072_s19 = sadd.s32 1, %s4028_s17   ;;  %s4028_s17 = sphi %s4059_s17, %s5326_s17   ;;  %s4024_s16 = sphi %s4057_s16, %s5325_s16   ;;  %s4020_s15 = sphi %s4055_s15, %s5324_s15  }
   0x3   : > { %s18_s20 = ssub.s32 %s4028_s17, %s4072_s19  ;;  %s21_s21 = sadd.s32 1, %s4024_s16 }
   0x4   : > { %p19_p0 = scmp.eq.s32.totalorder %s18_s20, 0  ;;  %p28_p1 = scmp.ne.s32.totalorder %s4024_s16, %s4020_s15 }
   0x5   : > { %p29_p2 = scmp.eq.s32.totalorder %s4028_s17, 0  ;;  %p2893_p4 = scmp.ge.s32.totalorder %s4028_s17, 4 }
   0x6   : > { %s4081_s22 = scalar_select %p19_p0, %s4024_s16, %s21_s21  }
   0x7   : > { %p30_p3 = por %p29_p2, %p28_p1  ;;  %152 = sbr.rel (%p2893_p4) target bundleno = 91 (0x5b), region = 28 }
   0xe   : > { %155 = sbr.rel (!%p30_p3) target bundleno = 91 (0x5b), region = 32  ;;  %s157_s23 = sand.u32 (%p30_p3), 1, %s4024_s16  }
   0xf   : > { %s3208_s24 = sshll.u32 (%p30_p3), %s4028_s17, 7  ;;  %s3960_s25 = smul.u32 (%p30_p3), 1152, %s157_s23 }
  0x10   : > { %s4089_s28 = scalar_lea.vmem (%p30_p3), %s5319_s0, %s3208_s24 }
  0x11   : > { %v178_v0 = vld [vmem:[%s4089_s28] sm:$0xff] (%p30_p3)   ;;  %v182_v1 = vld [vmem:[%s4089_s28 + $0x8] sm:$0xff] (%p30_p3)   ;;  %v186_v2 = vld [vmem:[%s4089_s28 + $0x10] sm:$0xff] (%p30_p3)   ;;  %s4097_s29 = scalar_lea.vmem (%p30_p3), [#allocation2], %s3960_s25 }
  0x12   : > { %v190_v3 = vld [vmem:[%s4089_s28 + $0x18] sm:$0xff] (%p30_p3)   ;;  %v194_v4 = vld [vmem:[%s4089_s28 + $0x20] sm:$0xff] (%p30_p3)   ;;  %v198_v5 = vld [vmem:[%s4089_s28 + $0x28] sm:$0xff] (%p30_p3)   ;;  %179 = vst [vmem:[%s4097_s29] sm:$0xff] (%p30_p3), %v178_v0  }
  0x13   : > { %183 = vst [vmem:[%s4097_s29 + $0x8] sm:$0xff] (%p30_p3), %v182_v1   ;;  %187 = vst [vmem:[%s4097_s29 + $0x10] sm:$0xff] (%p30_p3), %v186_v2   ;;  %v202_v6 = vld [vmem:[%s4089_s28 + $0x30] sm:$0xff] (%p30_p3)   ;;  %v206_v7 = vld [vmem:[%s4089_s28 + $0x38] sm:$0xff] (%p30_p3)  }
  0x14   : > { %191 = vst [vmem:[%s4097_s29 + $0x18] sm:$0xff] (%p30_p3), %v190_v3   ;;  %195 = vst [vmem:[%s4097_s29 + $0x20] sm:$0xff] (%p30_p3), %v194_v4   ;;  %v210_v8 = vld [vmem:[%s4089_s28 + $0x40] sm:$0xff] (%p30_p3)   ;;  %v214_v9 = vld [vmem:[%s4089_s28 + $0x48] sm:$0xff] (%p30_p3)  }
  0x15   : > { %199 = vst [vmem:[%s4097_s29 + $0x28] sm:$0xff] %v198_v5   ;;  %203 = vst [vmem:[%s4097_s29 + $0x30] sm:$0xff] %v202_v6   ;;  %v218_v10 = vld [vmem:[%s4089_s28 + $0x50] sm:$0xff]   ;;  %v222_v11 = vld [vmem:[%s4089_s28 + $0x58] sm:$0xff]  }
  0x16   : > { %207 = vst [vmem:[%s4097_s29 + $0x38] sm:$0xff] %v206_v7   ;;  %211 = vst [vmem:[%s4097_s29 + $0x40] sm:$0xff] %v210_v8   ;;  %v226_v12 = vld [vmem:[%s4089_s28 + $0x60] sm:$0xff]   ;;  %v230_v13 = vld [vmem:[%s4089_s28 + $0x68] sm:$0xff]  }
  0x17   : > { %215 = vst [vmem:[%s4097_s29 + $0x48] sm:$0xff] %v214_v9   ;;  %219 = vst [vmem:[%s4097_s29 + $0x50] sm:$0xff] %v218_v10   ;;  %v234_v14 = vld [vmem:[%s4089_s28 + $0x70] sm:$0xff]   ;;  %v238_v15 = vld [vmem:[%s4089_s28 + $0x78] sm:$0xff]  }
  0x18   : > { %223 = vst [vmem:[%s4097_s29 + $0x58] sm:$0xff] %v222_v11   ;;  %227 = vst [vmem:[%s4097_s29 + $0x60] sm:$0xff] %v226_v12   ;;  %v242_v16 = vld [vmem:[%s4089_s28 + $0x200] sm:$0xff]   ;;  %v246_v17 = vld [vmem:[%s4089_s28 + $0x208] sm:$0xff]  }
  0x19   : > { %231 = vst [vmem:[%s4097_s29 + $0x68] sm:$0xff] %v230_v13   ;;  %235 = vst [vmem:[%s4097_s29 + $0x70] sm:$0xff] %v234_v14   ;;  %v250_v18 = vld [vmem:[%s4089_s28 + $0x210] sm:$0xff]   ;;  %v254_v19 = vld [vmem:[%s4089_s28 + $0x218] sm:$0xff]  }
  0x1a   : > { %239 = vst [vmem:[%s4097_s29 + $0x78] sm:$0xff] %v238_v15   ;;  %243 = vst [vmem:[%s4097_s29 + $0x80] sm:$0xff] %v242_v16   ;;  %v258_v20 = vld [vmem:[%s4089_s28 + $0x220] sm:$0xff]   ;;  %v262_v21 = vld [vmem:[%s4089_s28 + $0x228] sm:$0xff]  }
  0x1b   : > { %247 = vst [vmem:[%s4097_s29 + $0x88] sm:$0xff] %v246_v17   ;;  %251 = vst [vmem:[%s4097_s29 + $0x90] sm:$0xff] %v250_v18   ;;  %v266_v22 = vld [vmem:[%s4089_s28 + $0x230] sm:$0xff]   ;;  %v270_v23 = vld [vmem:[%s4089_s28 + $0x238] sm:$0xff]  }
  0x1c   : > { %255 = vst [vmem:[%s4097_s29 + $0x98] sm:$0xff] %v254_v19   ;;  %259 = vst [vmem:[%s4097_s29 + $0xa0] sm:$0xff] %v258_v20   ;;  %v274_v24 = vld [vmem:[%s4089_s28 + $0x240] sm:$0xff]   ;;  %v278_v25 = vld [vmem:[%s4089_s28 + $0x248] sm:$0xff]  }
  0x1d   : > { %263 = vst [vmem:[%s4097_s29 + $0xa8] sm:$0xff] %v262_v21   ;;  %267 = vst [vmem:[%s4097_s29 + $0xb0] sm:$0xff] %v266_v22   ;;  %v282_v26 = vld [vmem:[%s4089_s28 + $0x250] sm:$0xff]   ;;  %v286_v27 = vld [vmem:[%s4089_s28 + $0x258] sm:$0xff]  }
  0x1e   : > { %271 = vst [vmem:[%s4097_s29 + $0xb8] sm:$0xff] %v270_v23   ;;  %275 = vst [vmem:[%s4097_s29 + $0xc0] sm:$0xff] %v274_v24   ;;  %v290_v28 = vld [vmem:[%s4089_s28 + $0x260] sm:$0xff]   ;;  %v294_v29 = vld [vmem:[%s4089_s28 + $0x268] sm:$0xff]  }
  0x1f   : > { %279 = vst [vmem:[%s4097_s29 + $0xc8] sm:$0xff] %v278_v25   ;;  %283 = vst [vmem:[%s4097_s29 + $0xd0] sm:$0xff] %v282_v26   ;;  %v298_v30 = vld [vmem:[%s4089_s28 + $0x270] sm:$0xff]   ;;  %v302_v31 = vld [vmem:[%s4089_s28 + $0x278] sm:$0xff]  }
  0x20   : > { %287 = vst [vmem:[%s4097_s29 + $0xd8] sm:$0xff] %v286_v27   ;;  %291 = vst [vmem:[%s4097_s29 + $0xe0] sm:$0xff] %v290_v28   ;;  %v306_v32 = vld [vmem:[%s4089_s28 + $0x400] sm:$0xff]   ;;  %v310_v33 = vld [vmem:[%s4089_s28 + $0x408] sm:$0xff]  }
  0x21   : > { %295 = vst [vmem:[%s4097_s29 + $0xe8] sm:$0xff] %v294_v29   ;;  %299 = vst [vmem:[%s4097_s29 + $0xf0] sm:$0xff] %v298_v30   ;;  %v314_v34 = vld [vmem:[%s4089_s28 + $0x410] sm:$0xff]   ;;  %v318_v35 = vld [vmem:[%s4089_s28 + $0x418] sm:$0xff]  }
  0x22   : > { %303 = vst [vmem:[%s4097_s29 + $0xf8] sm:$0xff] %v302_v31   ;;  %307 = vst [vmem:[%s4097_s29 + $0x100] sm:$0xff] %v306_v32   ;;  %v322_v36 = vld [vmem:[%s4089_s28 + $0x420] sm:$0xff]   ;;  %v326_v37 = vld [vmem:[%s4089_s28 + $0x428] sm:$0xff]  }
  0x23   : > { %311 = vst [vmem:[%s4097_s29 + $0x108] sm:$0xff] %v310_v33   ;;  %315 = vst [vmem:[%s4097_s29 + $0x110] sm:$0xff] %v314_v34   ;;  %v330_v38 = vld [vmem:[%s4089_s28 + $0x430] sm:$0xff]   ;;  %v334_v39 = vld [vmem:[%s4089_s28 + $0x438] sm:$0xff]  }
  0x24   : > { %319 = vst [vmem:[%s4097_s29 + $0x118] sm:$0xff] %v318_v35   ;;  %323 = vst [vmem:[%s4097_s29 + $0x120] sm:$0xff] %v322_v36   ;;  %v338_v40 = vld [vmem:[%s4089_s28 + $0x440] sm:$0xff]   ;;  %v342_v41 = vld [vmem:[%s4089_s28 + $0x448] sm:$0xff]  }
  0x25   : > { %327 = vst [vmem:[%s4097_s29 + $0x128] sm:$0xff] %v326_v37   ;;  %331 = vst [vmem:[%s4097_s29 + $0x130] sm:$0xff] %v330_v38   ;;  %v346_v42 = vld [vmem:[%s4089_s28 + $0x450] sm:$0xff]   ;;  %v350_v43 = vld [vmem:[%s4089_s28 + $0x458] sm:$0xff]  }
  0x26   : > { %335 = vst [vmem:[%s4097_s29 + $0x138] sm:$0xff] %v334_v39   ;;  %339 = vst [vmem:[%s4097_s29 + $0x140] sm:$0xff] %v338_v40   ;;  %v354_v44 = vld [vmem:[%s4089_s28 + $0x460] sm:$0xff]   ;;  %v358_v45 = vld [vmem:[%s4089_s28 + $0x468] sm:$0xff]  }
  0x27   : > { %343 = vst [vmem:[%s4097_s29 + $0x148] sm:$0xff] %v342_v41   ;;  %347 = vst [vmem:[%s4097_s29 + $0x150] sm:$0xff] %v346_v42   ;;  %v362_v46 = vld [vmem:[%s4089_s28 + $0x470] sm:$0xff]   ;;  %v366_v47 = vld [vmem:[%s4089_s28 + $0x478] sm:$0xff]  }
  0x28   : > { %351 = vst [vmem:[%s4097_s29 + $0x158] sm:$0xff] %v350_v43   ;;  %355 = vst [vmem:[%s4097_s29 + $0x160] sm:$0xff] %v354_v44   ;;  %v370_v48 = vld [vmem:[%s4089_s28 + $0x600] sm:$0xff]   ;;  %v374_v49 = vld [vmem:[%s4089_s28 + $0x608] sm:$0xff]  }
  0x29   : > { %359 = vst [vmem:[%s4097_s29 + $0x168] sm:$0xff] %v358_v45   ;;  %363 = vst [vmem:[%s4097_s29 + $0x170] sm:$0xff] %v362_v46   ;;  %v378_v50 = vld [vmem:[%s4089_s28 + $0x610] sm:$0xff]   ;;  %v382_v51 = vld [vmem:[%s4089_s28 + $0x618] sm:$0xff]  }
  0x2a   : > { %367 = vst [vmem:[%s4097_s29 + $0x178] sm:$0xff] %v366_v47   ;;  %371 = vst [vmem:[%s4097_s29 + $0x180] sm:$0xff] %v370_v48   ;;  %v386_v52 = vld [vmem:[%s4089_s28 + $0x620] sm:$0xff]   ;;  %v390_v53 = vld [vmem:[%s4089_s28 + $0x628] sm:$0xff]  }
  0x2b   : > { %375 = vst [vmem:[%s4097_s29 + $0x188] sm:$0xff] %v374_v49   ;;  %379 = vst [vmem:[%s4097_s29 + $0x190] sm:$0xff] %v378_v50   ;;  %v394_v54 = vld [vmem:[%s4089_s28 + $0x630] sm:$0xff]   ;;  %v398_v55 = vld [vmem:[%s4089_s28 + $0x638] sm:$0xff]  }
  0x2c   : > { %383 = vst [vmem:[%s4097_s29 + $0x198] sm:$0xff] %v382_v51   ;;  %387 = vst [vmem:[%s4097_s29 + $0x1a0] sm:$0xff] %v386_v52   ;;  %v402_v56 = vld [vmem:[%s4089_s28 + $0x640] sm:$0xff]   ;;  %v406_v57 = vld [vmem:[%s4089_s28 + $0x648] sm:$0xff]  }
  0x2d   : > { %391 = vst [vmem:[%s4097_s29 + $0x1a8] sm:$0xff] %v390_v53   ;;  %395 = vst [vmem:[%s4097_s29 + $0x1b0] sm:$0xff] %v394_v54   ;;  %v410_v58 = vld [vmem:[%s4089_s28 + $0x650] sm:$0xff]   ;;  %v414_v59 = vld [vmem:[%s4089_s28 + $0x658] sm:$0xff]  }
  0x2e   : > { %399 = vst [vmem:[%s4097_s29 + $0x1b8] sm:$0xff] %v398_v55   ;;  %403 = vst [vmem:[%s4097_s29 + $0x1c0] sm:$0xff] %v402_v56   ;;  %v418_v60 = vld [vmem:[%s4089_s28 + $0x660] sm:$0xff]   ;;  %v422_v61 = vld [vmem:[%s4089_s28 + $0x668] sm:$0xff]  }
  0x2f   : > { %407 = vst [vmem:[%s4097_s29 + $0x1c8] sm:$0xff] %v406_v57   ;;  %411 = vst [vmem:[%s4097_s29 + $0x1d0] sm:$0xff] %v410_v58   ;;  %v426_v62 = vld [vmem:[%s4089_s28 + $0x670] sm:$0xff]   ;;  %v430_v63 = vld [vmem:[%s4089_s28 + $0x678] sm:$0xff]  }
  0x30   : > { %415 = vst [vmem:[%s4097_s29 + $0x1d8] sm:$0xff] %v414_v59   ;;  %419 = vst [vmem:[%s4097_s29 + $0x1e0] sm:$0xff] %v418_v60   ;;  %v434_v0 = vld [vmem:[%s4089_s28 + $0x800] sm:$0xff]   ;;  %v438_v1 = vld [vmem:[%s4089_s28 + $0x808] sm:$0xff]  }
  0x31   : > { %423 = vst [vmem:[%s4097_s29 + $0x1e8] sm:$0xff] %v422_v61   ;;  %427 = vst [vmem:[%s4097_s29 + $0x1f0] sm:$0xff] %v426_v62   ;;  %v442_v2 = vld [vmem:[%s4089_s28 + $0x810] sm:$0xff]   ;;  %v446_v3 = vld [vmem:[%s4089_s28 + $0x818] sm:$0xff]  }
  0x32   : > { %431 = vst [vmem:[%s4097_s29 + $0x1f8] sm:$0xff] %v430_v63   ;;  %435 = vst [vmem:[%s4097_s29 + $0x200] sm:$0xff] %v434_v0   ;;  %v450_v4 = vld [vmem:[%s4089_s28 + $0x820] sm:$0xff]   ;;  %v454_v5 = vld [vmem:[%s4089_s28 + $0x828] sm:$0xff]  }
  0x33   : > { %439 = vst [vmem:[%s4097_s29 + $0x208] sm:$0xff] %v438_v1   ;;  %443 = vst [vmem:[%s4097_s29 + $0x210] sm:$0xff] %v442_v2   ;;  %v458_v6 = vld [vmem:[%s4089_s28 + $0x830] sm:$0xff]   ;;  %v462_v7 = vld [vmem:[%s4089_s28 + $0x838] sm:$0xff]  }
  0x34   : > { %447 = vst [vmem:[%s4097_s29 + $0x218] sm:$0xff] %v446_v3   ;;  %451 = vst [vmem:[%s4097_s29 + $0x220] sm:$0xff] %v450_v4   ;;  %v466_v8 = vld [vmem:[%s4089_s28 + $0x840] sm:$0xff]   ;;  %v470_v9 = vld [vmem:[%s4089_s28 + $0x848] sm:$0xff]  }
  0x35   : > { %455 = vst [vmem:[%s4097_s29 + $0x228] sm:$0xff] %v454_v5   ;;  %459 = vst [vmem:[%s4097_s29 + $0x230] sm:$0xff] %v458_v6   ;;  %v474_v10 = vld [vmem:[%s4089_s28 + $0x850] sm:$0xff]   ;;  %v478_v11 = vld [vmem:[%s4089_s28 + $0x858] sm:$0xff]  }
  0x36   : > { %463 = vst [vmem:[%s4097_s29 + $0x238] sm:$0xff] %v462_v7   ;;  %467 = vst [vmem:[%s4097_s29 + $0x240] sm:$0xff] %v466_v8   ;;  %v482_v12 = vld [vmem:[%s4089_s28 + $0x860] sm:$0xff]   ;;  %v486_v13 = vld [vmem:[%s4089_s28 + $0x868] sm:$0xff]  }
  0x37   : > { %471 = vst [vmem:[%s4097_s29 + $0x248] sm:$0xff] %v470_v9   ;;  %475 = vst [vmem:[%s4097_s29 + $0x250] sm:$0xff] %v474_v10   ;;  %v490_v14 = vld [vmem:[%s4089_s28 + $0x870] sm:$0xff]   ;;  %v494_v15 = vld [vmem:[%s4089_s28 + $0x878] sm:$0xff]  }
  0x38   : > { %479 = vst [vmem:[%s4097_s29 + $0x258] sm:$0xff] %v478_v11   ;;  %483 = vst [vmem:[%s4097_s29 + $0x260] sm:$0xff] %v482_v12   ;;  %v498_v16 = vld [vmem:[%s4089_s28 + $0xa00] sm:$0xff]   ;;  %v502_v17 = vld [vmem:[%s4089_s28 + $0xa08] sm:$0xff]  }
  0x39   : > { %487 = vst [vmem:[%s4097_s29 + $0x268] sm:$0xff] %v486_v13   ;;  %491 = vst [vmem:[%s4097_s29 + $0x270] sm:$0xff] %v490_v14   ;;  %v506_v18 = vld [vmem:[%s4089_s28 + $0xa10] sm:$0xff]   ;;  %v510_v19 = vld [vmem:[%s4089_s28 + $0xa18] sm:$0xff]  }
  0x3a   : > { %495 = vst [vmem:[%s4097_s29 + $0x278] sm:$0xff] %v494_v15   ;;  %499 = vst [vmem:[%s4097_s29 + $0x280] sm:$0xff] %v498_v16   ;;  %v514_v20 = vld [vmem:[%s4089_s28 + $0xa20] sm:$0xff]   ;;  %v518_v21 = vld [vmem:[%s4089_s28 + $0xa28] sm:$0xff]  }
  0x3b   : > { %503 = vst [vmem:[%s4097_s29 + $0x288] sm:$0xff] %v502_v17   ;;  %507 = vst [vmem:[%s4097_s29 + $0x290] sm:$0xff] %v506_v18   ;;  %v522_v22 = vld [vmem:[%s4089_s28 + $0xa30] sm:$0xff]   ;;  %v526_v23 = vld [vmem:[%s4089_s28 + $0xa38] sm:$0xff]  }
  0x3c   : > { %511 = vst [vmem:[%s4097_s29 + $0x298] sm:$0xff] %v510_v19   ;;  %515 = vst [vmem:[%s4097_s29 + $0x2a0] sm:$0xff] %v514_v20   ;;  %v530_v24 = vld [vmem:[%s4089_s28 + $0xa40] sm:$0xff]   ;;  %v534_v25 = vld [vmem:[%s4089_s28 + $0xa48] sm:$0xff]  }
  0x3d   : > { %519 = vst [vmem:[%s4097_s29 + $0x2a8] sm:$0xff] %v518_v21   ;;  %523 = vst [vmem:[%s4097_s29 + $0x2b0] sm:$0xff] %v522_v22   ;;  %v538_v26 = vld [vmem:[%s4089_s28 + $0xa50] sm:$0xff]   ;;  %v542_v27 = vld [vmem:[%s4089_s28 + $0xa58] sm:$0xff]  }
  0x3e   : > { %527 = vst [vmem:[%s4097_s29 + $0x2b8] sm:$0xff] %v526_v23   ;;  %531 = vst [vmem:[%s4097_s29 + $0x2c0] sm:$0xff] %v530_v24   ;;  %v546_v28 = vld [vmem:[%s4089_s28 + $0xa60] sm:$0xff]   ;;  %v550_v29 = vld [vmem:[%s4089_s28 + $0xa68] sm:$0xff]  }
  0x3f   : > { %535 = vst [vmem:[%s4097_s29 + $0x2c8] sm:$0xff] %v534_v25   ;;  %539 = vst [vmem:[%s4097_s29 + $0x2d0] sm:$0xff] %v538_v26   ;;  %v554_v30 = vld [vmem:[%s4089_s28 + $0xa70] sm:$0xff]   ;;  %v558_v31 = vld [vmem:[%s4089_s28 + $0xa78] sm:$0xff]  }
  0x40   : > { %543 = vst [vmem:[%s4097_s29 + $0x2d8] sm:$0xff] %v542_v27   ;;  %547 = vst [vmem:[%s4097_s29 + $0x2e0] sm:$0xff] %v546_v28   ;;  %v562_v32 = vld [vmem:[%s4089_s28 + $0xc00] sm:$0xff]   ;;  %v566_v33 = vld [vmem:[%s4089_s28 + $0xc08] sm:$0xff]  }
  0x41   : > { %551 = vst [vmem:[%s4097_s29 + $0x2e8] sm:$0xff] %v550_v29   ;;  %555 = vst [vmem:[%s4097_s29 + $0x2f0] sm:$0xff] %v554_v30   ;;  %v570_v34 = vld [vmem:[%s4089_s28 + $0xc10] sm:$0xff]   ;;  %v574_v35 = vld [vmem:[%s4089_s28 + $0xc18] sm:$0xff]  }
  0x42   : > { %559 = vst [vmem:[%s4097_s29 + $0x2f8] sm:$0xff] %v558_v31   ;;  %563 = vst [vmem:[%s4097_s29 + $0x300] sm:$0xff] %v562_v32   ;;  %v578_v36 = vld [vmem:[%s4089_s28 + $0xc20] sm:$0xff]   ;;  %v582_v37 = vld [vmem:[%s4089_s28 + $0xc28] sm:$0xff]  }
  0x43   : > { %567 = vst [vmem:[%s4097_s29 + $0x308] sm:$0xff] %v566_v33   ;;  %571 = vst [vmem:[%s4097_s29 + $0x310] sm:$0xff] %v570_v34   ;;  %v586_v38 = vld [vmem:[%s4089_s28 + $0xc30] sm:$0xff]   ;;  %v590_v39 = vld [vmem:[%s4089_s28 + $0xc38] sm:$0xff]  }
  0x44   : > { %575 = vst [vmem:[%s4097_s29 + $0x318] sm:$0xff] %v574_v35   ;;  %579 = vst [vmem:[%s4097_s29 + $0x320] sm:$0xff] %v578_v36   ;;  %v594_v40 = vld [vmem:[%s4089_s28 + $0xc40] sm:$0xff]   ;;  %v598_v41 = vld [vmem:[%s4089_s28 + $0xc48] sm:$0xff]  }
  0x45   : > { %583 = vst [vmem:[%s4097_s29 + $0x328] sm:$0xff] %v582_v37   ;;  %587 = vst [vmem:[%s4097_s29 + $0x330] sm:$0xff] %v586_v38   ;;  %v602_v42 = vld [vmem:[%s4089_s28 + $0xc50] sm:$0xff]   ;;  %v606_v43 = vld [vmem:[%s4089_s28 + $0xc58] sm:$0xff]  }
  0x46   : > { %591 = vst [vmem:[%s4097_s29 + $0x338] sm:$0xff] %v590_v39   ;;  %595 = vst [vmem:[%s4097_s29 + $0x340] sm:$0xff] %v594_v40   ;;  %v610_v44 = vld [vmem:[%s4089_s28 + $0xc60] sm:$0xff]   ;;  %v614_v45 = vld [vmem:[%s4089_s28 + $0xc68] sm:$0xff]  }
  0x47   : > { %599 = vst [vmem:[%s4097_s29 + $0x348] sm:$0xff] %v598_v41   ;;  %603 = vst [vmem:[%s4097_s29 + $0x350] sm:$0xff] %v602_v42   ;;  %v618_v46 = vld [vmem:[%s4089_s28 + $0xc70] sm:$0xff]   ;;  %v622_v47 = vld [vmem:[%s4089_s28 + $0xc78] sm:$0xff]  }
  0x48   : > { %607 = vst [vmem:[%s4097_s29 + $0x358] sm:$0xff] %v606_v43   ;;  %611 = vst [vmem:[%s4097_s29 + $0x360] sm:$0xff] %v610_v44   ;;  %v626_v48 = vld [vmem:[%s4089_s28 + $0xe00] sm:$0xff]   ;;  %v630_v49 = vld [vmem:[%s4089_s28 + $0xe08] sm:$0xff]  }
  0x49   : > { %615 = vst [vmem:[%s4097_s29 + $0x368] sm:$0xff] %v614_v45   ;;  %619 = vst [vmem:[%s4097_s29 + $0x370] sm:$0xff] %v618_v46   ;;  %v634_v50 = vld [vmem:[%s4089_s28 + $0xe10] sm:$0xff]   ;;  %v638_v51 = vld [vmem:[%s4089_s28 + $0xe18] sm:$0xff]  }
  0x4a   : > { %623 = vst [vmem:[%s4097_s29 + $0x378] sm:$0xff] %v622_v47   ;;  %627 = vst [vmem:[%s4097_s29 + $0x380] sm:$0xff] %v626_v48   ;;  %v642_v52 = vld [vmem:[%s4089_s28 + $0xe20] sm:$0xff]   ;;  %v646_v53 = vld [vmem:[%s4089_s28 + $0xe28] sm:$0xff]  }
  0x4b   : > { %631 = vst [vmem:[%s4097_s29 + $0x388] sm:$0xff] %v630_v49   ;;  %635 = vst [vmem:[%s4097_s29 + $0x390] sm:$0xff] %v634_v50   ;;  %v650_v54 = vld [vmem:[%s4089_s28 + $0xe30] sm:$0xff]   ;;  %v654_v55 = vld [vmem:[%s4089_s28 + $0xe38] sm:$0xff]  }
  0x4c   : > { %639 = vst [vmem:[%s4097_s29 + $0x398] sm:$0xff] %v638_v51   ;;  %643 = vst [vmem:[%s4097_s29 + $0x3a0] sm:$0xff] %v642_v52   ;;  %v658_v56 = vld [vmem:[%s4089_s28 + $0xe40] sm:$0xff]   ;;  %v662_v57 = vld [vmem:[%s4089_s28 + $0xe48] sm:$0xff]  }
  0x4d   : > { %647 = vst [vmem:[%s4097_s29 + $0x3a8] sm:$0xff] %v646_v53   ;;  %651 = vst [vmem:[%s4097_s29 + $0x3b0] sm:$0xff] %v650_v54   ;;  %v666_v58 = vld [vmem:[%s4089_s28 + $0xe50] sm:$0xff]   ;;  %v670_v59 = vld [vmem:[%s4089_s28 + $0xe58] sm:$0xff]  }
  0x4e   : > { %655 = vst [vmem:[%s4097_s29 + $0x3b8] sm:$0xff] %v654_v55   ;;  %659 = vst [vmem:[%s4097_s29 + $0x3c0] sm:$0xff] %v658_v56   ;;  %v674_v60 = vld [vmem:[%s4089_s28 + $0xe60] sm:$0xff]   ;;  %v678_v61 = vld [vmem:[%s4089_s28 + $0xe68] sm:$0xff]  }
  0x4f   : > { %663 = vst [vmem:[%s4097_s29 + $0x3c8] sm:$0xff] %v662_v57   ;;  %667 = vst [vmem:[%s4097_s29 + $0x3d0] sm:$0xff] %v666_v58   ;;  %v682_v62 = vld [vmem:[%s4089_s28 + $0xe70] sm:$0xff]   ;;  %v686_v63 = vld [vmem:[%s4089_s28 + $0xe78] sm:$0xff]  }
  0x50   : > { %671 = vst [vmem:[%s4097_s29 + $0x3d8] sm:$0xff] %v670_v59   ;;  %675 = vst [vmem:[%s4097_s29 + $0x3e0] sm:$0xff] %v674_v60   ;;  %v690_v0 = vld [vmem:[%s4089_s28 + $0x1000] sm:$0xff]   ;;  %v694_v1 = vld [vmem:[%s4089_s28 + $0x1008] sm:$0xff]  }
  0x51   : > { %679 = vst [vmem:[%s4097_s29 + $0x3e8] sm:$0xff] %v678_v61   ;;  %683 = vst [vmem:[%s4097_s29 + $0x3f0] sm:$0xff] %v682_v62   ;;  %v698_v2 = vld [vmem:[%s4089_s28 + $0x1010] sm:$0xff]   ;;  %v702_v3 = vld [vmem:[%s4089_s28 + $0x1018] sm:$0xff]  }
  0x52   : > { %687 = vst [vmem:[%s4097_s29 + $0x3f8] sm:$0xff] %v686_v63   ;;  %691 = vst [vmem:[%s4097_s29 + $0x400] sm:$0xff] %v690_v0   ;;  %v706_v4 = vld [vmem:[%s4089_s28 + $0x1020] sm:$0xff]   ;;  %v710_v5 = vld [vmem:[%s4089_s28 + $0x1028] sm:$0xff]  }
  0x53   : > { %695 = vst [vmem:[%s4097_s29 + $0x408] sm:$0xff] %v694_v1   ;;  %699 = vst [vmem:[%s4097_s29 + $0x410] sm:$0xff] %v698_v2   ;;  %v714_v6 = vld [vmem:[%s4089_s28 + $0x1030] sm:$0xff]   ;;  %v718_v7 = vld [vmem:[%s4089_s28 + $0x1038] sm:$0xff]  }
  0x54   : > { %703 = vst [vmem:[%s4097_s29 + $0x418] sm:$0xff] %v702_v3   ;;  %707 = vst [vmem:[%s4097_s29 + $0x420] sm:$0xff] %v706_v4   ;;  %v722_v8 = vld [vmem:[%s4089_s28 + $0x1040] sm:$0xff]   ;;  %v726_v9 = vld [vmem:[%s4089_s28 + $0x1048] sm:$0xff]  }
  0x55   : > { %711 = vst [vmem:[%s4097_s29 + $0x428] sm:$0xff] %v710_v5   ;;  %715 = vst [vmem:[%s4097_s29 + $0x430] sm:$0xff] %v714_v6   ;;  %v730_v10 = vld [vmem:[%s4089_s28 + $0x1050] sm:$0xff]   ;;  %v734_v11 = vld [vmem:[%s4089_s28 + $0x1058] sm:$0xff]  }
  0x56   : > { %719 = vst [vmem:[%s4097_s29 + $0x438] sm:$0xff] %v718_v7   ;;  %723 = vst [vmem:[%s4097_s29 + $0x440] sm:$0xff] %v722_v8   ;;  %v738_v12 = vld [vmem:[%s4089_s28 + $0x1060] sm:$0xff]   ;;  %v742_v13 = vld [vmem:[%s4089_s28 + $0x1068] sm:$0xff]  }
  0x57   : > { %727 = vst [vmem:[%s4097_s29 + $0x448] sm:$0xff] %v726_v9   ;;  %731 = vst [vmem:[%s4097_s29 + $0x450] sm:$0xff] %v730_v10   ;;  %v746_v14 = vld [vmem:[%s4089_s28 + $0x1070] sm:$0xff]   ;;  %v750_v15 = vld [vmem:[%s4089_s28 + $0x1078] sm:$0xff]  }
  0x58   : > { %735 = vst [vmem:[%s4097_s29 + $0x458] sm:$0xff] %v734_v11   ;;  %739 = vst [vmem:[%s4097_s29 + $0x460] sm:$0xff] %v738_v12  }
  0x59   : > { %743 = vst [vmem:[%s4097_s29 + $0x468] sm:$0xff] %v742_v13   ;;  %747 = vst [vmem:[%s4097_s29 + $0x470] sm:$0xff] %v746_v14  }
  0x5a   : > { %751 = vst [vmem:[%s4097_s29 + $0x478] sm:$0xff] %v750_v15  }
  0x5b PF: > { %p2896_p5 = scmp.ge.s32.totalorder %s4028_s17, 1  ;;  %p1351_p6 = scmp.lt.s32.totalorder %s4028_s17, 5 }
  0x5d   : > { %p1352_p7 = pnand %p2896_p5, %p1351_p6 }
  0x5e   : > { %s1358_s30 = sand.u32 (!%p1352_p7), 1, %s4020_s15   ;;  %v4387_v16 = vld [vmem:[%s5320_s1] ss:$0 sm:$0xff] (!%p1352_p7)  ;;  %v4392_v17 = vld [vmem:[%s5320_s1 + $0x1] ss:$0 sm:$0xff] (!%p1352_p7)  ;;  %vm2795_vm0 = vcmask (!%p1352_p7), 44032  }
  0x5f   : > { %1355 = sbr.rel (%p1352_p7) target bundleno = 347 (0x15b), region = 73  ;;  %v4397_v18 = vld [vmem:[%s5320_s1 + $0x2] ss:$0 sm:$0xff] (!%p1352_p7)  ;;  %v4402_v19 = vld [vmem:[%s5320_s1 + $0x3] ss:$0 sm:$0xff] (!%p1352_p7) }
  0x60   : > { %s3961_s5 = smul.u32 (!%p1352_p7), 1152, %s1358_s30  ;;  %v4407_v20 = vld [vmem:[%s5320_s1 + $0x4] ss:$0 sm:$0xff] (!%p1352_p7)  ;;  %v4428_v41 = vld [vmem:[%s5320_s1 + $0x5] ss:$0 sm:$0xff] (!%p1352_p7)  ;;  %s4465_s30 = sshll.u32 (!%p1352_p7), %s2890_s18, 5 }
  0x61   : > { %v4435_v45 = vld [vmem:[%s5320_s1 + $0x6] ss:$0 sm:$0xff] (!%p1352_p7)  ;;  %v4443_v51 = vld [vmem:[%s5320_s1 + $0x7] ss:$0 sm:$0xff] (!%p1352_p7)  ;;  %v4448_v52 = vld [vmem:[%s5320_s1 + $0x8] ss:$0 sm:$0xff] (!%p1352_p7) }
  0x62   : > { %s4409_s20 = scalar_lea.vmem (!%p1352_p7), [#allocation2], %s3961_s5  ;;  %p1385_p8 = scmp.lt.s32.totalorder (!%p1352_p7), %s4465_s30, 127 }
  0x63   : > { %v3242_v21 = vld [vmem:[%s4409_s20] sm:$0xff] (!%p1352_p7)   ;;  %v3817_v60 = vld [vmem:[%s4409_s20 + $0x8] sm:$0xff] (!%p1352_p7)  }
  0x64   : > { %v3832_v22 = vld [vmem:[%s4409_s20 + $0x80] sm:$0xff] (!%p1352_p7)   ;;  %v3243_v24 = vunpack.c.l.bf16 (!%p1352_p7), %v3242_v21  ;;  %v3244_v30 = vunpack.c.h.bf16 (!%p1352_p7), %v3242_v21  ;;  %v3833_v1 = vld [vmem:[%s4409_s20 + $0x88] sm:$0xff] (!%p1352_p7)   ;;  %v3247_v11 = vunpack.c.l.bf16 (!%p1352_p7), %v3817_v60 }
  0x65   : > { %v3848_v23 = vld [vmem:[%s4409_s20 + $0x100] sm:$0xff] (!%p1352_p7)   ;;  %v3307_v25 = vunpack.c.l.bf16 (!%p1352_p7), %v3832_v22  ;;  %v3308_v37 = vunpack.c.h.bf16 (!%p1352_p7), %v3832_v22  ;;  %v3849_v2 = vld [vmem:[%s4409_s20 + $0x108] sm:$0xff] (!%p1352_p7)   ;;  %v3311_v15 = vunpack.c.l.bf16 (!%p1352_p7), %v3833_v1 }
  0x66   : > { %v3371_v26 = vunpack.c.l.bf16 %v3848_v23  ;;  %v3864_v27 = vld [vmem:[%s4409_s20 + $0x180] sm:$0xff]   ;;  %v1461_v38 = vmul.f32 %v3243_v24, %v4387_v16  ;;  %v1462_v49 = vmul.f32 %v3244_v30, %v4387_v16  ;;  %v3372_v54 = vunpack.c.h.bf16 %v3848_v23  ;;  %v4461_v7 = vld [vmem:[%s4409_s20 + $0x188] sm:$0xff]   ;;  %s5328_s30 = smov (!%p1385_p8, %s4465_s30), 127 }
  0x67   : > { %v3880_v28 = vld [vmem:[%s4409_s20 + $0x200] sm:$0xff]   ;;  %v3435_v31 = vunpack.c.l.bf16 %v3864_v27  ;;  %v1566_v39 = vmul.f32 %v3307_v25, %v4392_v17  ;;  %v1567_v53 = vmul.f32 %v3308_v37, %v4392_v17  ;;  %v3436_v55 = vunpack.c.h.bf16 %v3864_v27  ;;  %v4469_v12 = vld [vmem:[%s4409_s20 + $0x208] sm:$0xff]   ;;  %s2898_s7 = sshll.u32 %s5328_s30, 2 }
  0x68   : > { %v3896_v29 = vld [vmem:[%s4409_s20 + $0x280] sm:$0xff]   ;;  %v3499_v32 = vunpack.c.l.bf16 %v3880_v28  ;;  %v1703_v40 = vmul.f32 %v3371_v26, %v4397_v18  ;;  %v3500_v58 = vunpack.c.h.bf16 %v3880_v28  ;;  %v1704_v62 = vmul.f32 %v3372_v54, %v4397_v18  ;;  %v4473_v22 = vld [vmem:[%s4409_s20 + $0x288] sm:$0xff]   ;;  %s4535_s10 = scalar_lea.vmem %s5323_s4, %s2898_s7 }
  0x69   : > { %v3563_v33 = vunpack.c.l.bf16 %v3896_v29  ;;  %v3912_v34 = vld [vmem:[%s4409_s20 + $0x300] sm:$0xff]   ;;  %v1840_v43 = vmul.f32 %v3435_v31, %v4402_v19  ;;  %v1598_v46 = vadd.f32 %v1566_v39, %v1461_v38  ;;  %v3564_v59 = vunpack.c.h.bf16 %v3896_v29  ;;  %v4476_v23 = vld [vmem:[%s4409_s20 + $0x308] sm:$0xff]  }
  0x6a   : > { %v3928_v35 = vld [vmem:[%s4409_s20 + $0x380] sm:$0xff]   ;;  %v3627_v42 = vunpack.c.l.bf16 %v3912_v34  ;;  %v1977_v44 = vmul.f32 %v3499_v32, %v4407_v20  ;;  %v1599_v61 = vadd.f32 %v1567_v53, %v1462_v49  ;;  %v1841_v63 = vmul.f32 %v3436_v55, %v4402_v19  ;;  %v4486_v32 = vld [vmem:[%s4409_s20 + $0x388] sm:$0xff]  }
  0x6b   : > { %v4420_v36 = vld [vmem:[%s4409_s20 + $0x400] sm:$0xff]   ;;  %v3691_v47 = vunpack.c.l.bf16 %v3928_v35  ;;  %v2114_v50 = vmul.f32 %v3563_v33, %v4428_v41  ;;  %v1735_v56 = vadd.f32 %v1703_v40, %v1598_v46  ;;  %v3628_v0 = vunpack.c.h.bf16 %v3912_v34 }
  0x6c   : > { %v3755_v48 = vunpack.c.l.bf16 %v4420_v36  ;;  %v2251_v57 = vmul.f32 %v3627_v42, %v4435_v45  ;;  %v1978_v6 = vmul.f32 %v3500_v58, %v4407_v20  ;;  %v1736_v8 = vadd.f32 %v1704_v62, %v1599_v61  ;;  %v4494_v42 = vld [vmem:[%s4409_s20 + $0x408] sm:$0xff]   ;;  %v4508_v54 = vld [vmem:[%s5321_s2] ss:$0 sm:$0xff] }
  0x6d   : > { %v1872_v3 = vadd.f32 %v1840_v43, %v1735_v56  ;;  %v2388_v4 = vmul.f32 %v3691_v47, %v4443_v51  ;;  %v2115_v9 = vmul.f32 %v3564_v59, %v4428_v41  ;;  %v3692_v10 = vunpack.c.h.bf16 %v3928_v35 }
  0x6e   : > { %v2525_v5 = vmul.f32 %v3755_v48, %v4448_v52  ;;  %v3756_v14 = vunpack.c.h.bf16 %v4420_v36  ;;  %v3375_v21 = vunpack.c.l.bf16 %v3849_v2  ;;  %v1873_v24 = vadd.f32 %v1841_v63, %v1736_v8 }
  0x6f   : > { %v2009_v13 = vadd.f32 %v1977_v44, %v1872_v3  ;;  %v2252_v25 = vmul.f32 %v3628_v0, %v4435_v45  ;;  %v1463_v26 = vmul.f32 %v3247_v11, %v4387_v16  ;;  %v3439_v27 = vunpack.c.l.bf16 %v4461_v7 }
  0x70   : > { %v1568_v29 = vmul.f32 %v3311_v15, %v4392_v17  ;;  %v1705_v30 = vmul.f32 %v3375_v21, %v4397_v18  ;;  %v3503_v31 = vunpack.c.l.bf16 %v4469_v12  ;;  %v2010_v33 = vadd.f32 %v1978_v6, %v1873_v24  ;;  %v3834_v24 = vld [vmem:[%s4409_s20 + $0x90] sm:$0xff]  }
  0x71   : > { %v2146_v28 = vadd.f32 %v2114_v50, %v2009_v13  ;;  %v2389_v34 = vmul.f32 %v3692_v10, %v4443_v51  ;;  %v3567_v35 = vunpack.c.l.bf16 %v4473_v22  ;;  %v3631_v36 = vunpack.c.l.bf16 %v4476_v23  ;;  %v3818_v13 = vld [vmem:[%s4409_s20 + $0x10] sm:$0xff]  }
  0x72   : > { %v2526_v38 = vmul.f32 %v3756_v14, %v4448_v52  ;;  %v1600_v39 = vadd.f32 %v1568_v29, %v1463_v26  ;;  %v1842_v40 = vmul.f32 %v3439_v27, %v4402_v19  ;;  %v2147_v43 = vadd.f32 %v2115_v9, %v2010_v33  ;;  %v3850_v27 = vld [vmem:[%s4409_s20 + $0x110] sm:$0xff]  }
  0x73   : > { %v2283_v37 = vadd.f32 %v2251_v57, %v2146_v28  ;;  %v1979_v44 = vmul.f32 %v3503_v31, %v4407_v20  ;;  %v2116_v46 = vmul.f32 %v3567_v35, %v4428_v41  ;;  %v3695_v47 = vunpack.c.l.bf16 %v4486_v32  ;;  %v3866_v28 = vld [vmem:[%s4409_s20 + $0x190] sm:$0xff]  }
  0x74   : > { %v1737_v49 = vadd.f32 %v1705_v30, %v1600_v39  ;;  %v2253_v50 = vmul.f32 %v3631_v36, %v4435_v45  ;;  %v3248_v53 = vunpack.c.h.bf16 %v3817_v60  ;;  %v2284_v55 = vadd.f32 %v2252_v25, %v2147_v43  ;;  %v4516_v60 = vld [vmem:[%s5322_s3] ss:$0 sm:$0xff]  ;;  %v3898_v39 = vld [vmem:[%s4409_s20 + $0x290] sm:$0xff]  }
  0x75   : > { %v2420_v48 = vadd.f32 %v2388_v4, %v2283_v37  ;;  %v3759_v56 = vunpack.c.l.bf16 %v4494_v42  ;;  %v3312_v57 = vunpack.c.h.bf16 %v3833_v1  ;;  %v3376_v58 = vunpack.c.h.bf16 %v3849_v2 }
  0x76   : > { %v1874_v61 = vadd.f32 %v1842_v40, %v1737_v49  ;;  %v1464_v62 = vmul.f32 %v3248_v53, %v4387_v16  ;;  %v3440_v63 = vunpack.c.h.bf16 %v4461_v7  ;;  %v2421_v0 = vadd.f32 %v2389_v34, %v2284_v55  ;;  %v3882_v34 = vld [vmem:[%s4409_s20 + $0x210] sm:$0xff]  }
  0x77   : > { %v2557_v59 = vadd.f32 %v2525_v5, %v2420_v48  ;;  %v1569_v3 = vmul.f32 %v3312_v57, %v4392_v17  ;;  %v1706_v4 = vmul.f32 %v3376_v58, %v4397_v18  ;;  %v3504_v1 = vunpack.c.h.bf16 %v4469_v12  ;;  %v4555_v57 = vld [vmem:[%s4409_s20 + $0x390] sm:$0xff]  }
  0x78   : > { %v2011_v5 = vadd.f32 %v1979_v44, %v1874_v61  ;;  %v2390_v6 = vmul.f32 %v3695_v47, %v4443_v51  ;;  %v3568_v7 = vunpack.c.h.bf16 %v4473_v22  ;;  %v2558_v8 = vadd.f32 %v2526_v38, %v2421_v0 }
  0x79   : > { %v2596_v2 = vmul.f32 %v4508_v54, %v2557_v59  ;;  %v1601_v9 = vadd.f32 %v1569_v3, %v1464_v62  ;;  %v1843_v10 = vmul.f32 %v3440_v63, %v4402_v19  ;;  %v3632_v11 = vunpack.c.h.bf16 %v4476_v23  ;;  %v4561_v63 = vld [vmem:[%s4409_s20 + $0x410] sm:$0xff]  }
  0x7a   : > { %v2148_v12 = vadd.f32 %v2116_v46, %v2011_v5  ;;  %v2527_v15 = vmul.f32 %v3759_v56, %v4448_v52  ;;  %v1980_v21 = vmul.f32 %v3504_v1, %v4407_v20  ;;  %v2597_v22 = vmul.f32 %v4508_v54, %v2558_v8  ;;  %v3914_v46 = vld [vmem:[%s4409_s20 + $0x310] sm:$0xff]  }
  0x7b   : > { %v2635_v14 = vadd.f32 %v4516_v60, %v2596_v2  ;;  %v1738_v23 = vadd.f32 %v1706_v4, %v1601_v9  ;;  %v2117_v25 = vmul.f32 %v3568_v7, %v4428_v41  ;;  %v3696_v26 = vunpack.c.h.bf16 %v4486_v32 }
  0x7c   : > { %v2285_v30 = vadd.f32 %v2253_v50, %v2148_v12  ;;  %v2254_v31 = vmul.f32 %v3632_v11, %v4435_v45  ;;  %v3251_v33 = vunpack.c.l.bf16 %v3818_v13  ;;  %v2636_v35 = vadd.f32 %v4516_v60, %v2597_v22 }
  0x7d   : > { %v3209_v29 = vpack.c.bf16 %v2635_v14, %v2635_v14  ;;  %v1875_v36 = vadd.f32 %v1843_v10, %v1738_v23  ;;  %v3760_v37 = vunpack.c.h.bf16 %v4494_v42  ;;  %v3315_v38 = vunpack.c.l.bf16 %v3834_v24 }
  0x7e   : > { %v2422_v32 = vadd.f32 %v2390_v6, %v2285_v30  ;;  %v1465_v40 = vmul.f32 %v3251_v33, %v4387_v16  ;;  %v3379_v43 = vunpack.c.l.bf16 %v3850_v27  ;;  %v3443_v44 = vunpack.c.l.bf16 %v3866_v28  ;;  %v3819_v33 = vld [vmem:[%s4409_s20 + $0x18] sm:$0xff]  }
  0x7f   : > { %2796 = vst.msk [vmem:[%s4535_s10] sm:$0xf] %vm2795_vm0, %v3209_v29  ;;  %v3210_v47 = vpack.c.bf16 %v2636_v35, %v2636_v35  ;;  %v2012_v48 = vadd.f32 %v1980_v21, %v1875_v36  ;;  %v1570_v49 = vmul.f32 %v3315_v38, %v4392_v17  ;;  %v3507_v50 = vunpack.c.l.bf16 %v3882_v34 }
  0x80   : > { %v2559_v53 = vadd.f32 %v2527_v15, %v2422_v32  ;;  %v2391_v42 = vmul.f32 %v3696_v26, %v4443_v51  ;;  %v1707_v55 = vmul.f32 %v3379_v43, %v4397_v18  ;;  %v3571_v56 = vunpack.c.l.bf16 %v3898_v39  ;;  %v3851_v32 = vld [vmem:[%s4409_s20 + $0x118] sm:$0xff]  }
  0x81   : > { %2797 = vst.msk [vmem:[%s4535_s10 + $0x4] sm:$0xf] %vm2795_vm0, %v3210_v47  ;;  %v2149_v58 = vadd.f32 %v2117_v25, %v2012_v48  ;;  %v1602_v59 = vadd.f32 %v1570_v49, %v1465_v40  ;;  %v1844_v61 = vmul.f32 %v3443_v44, %v4402_v19  ;;  %v3635_v62 = vunpack.c.l.bf16 %v3914_v46  ;;  %v3867_v48 = vld [vmem:[%s4409_s20 + $0x198] sm:$0xff]  }
  0x82   : > { %v2598_v0 = vmul.f32 %v4508_v54, %v2559_v53  ;;  %v2528_v3 = vmul.f32 %v3760_v37, %v4448_v52  ;;  %v1981_v4 = vmul.f32 %v3507_v50, %v4407_v20  ;;  %v2118_v1 = vmul.f32 %v3571_v56, %v4428_v41  ;;  %v3835_v37 = vld [vmem:[%s4409_s20 + $0x98] sm:$0xff]  }
  0x83   : > { %v2286_v2 = vadd.f32 %v2254_v31, %v2149_v58  ;;  %v1739_v5 = vadd.f32 %v1707_v55, %v1602_v59  ;;  %v3699_v6 = vunpack.c.l.bf16 %v4555_v57  ;;  %v3252_v7 = vunpack.c.h.bf16 %v3818_v13  ;;  %v4591_v55 = vld [vmem:[%s4409_s20 + $0x298] sm:$0xff]  }
  0x84   : > { %v2637_v8 = vadd.f32 %v4516_v60, %v2598_v0  ;;  %v2255_v9 = vmul.f32 %v3635_v62, %v4435_v45  ;;  %v3763_v10 = vunpack.c.l.bf16 %v4561_v63  ;;  %v3316_v11 = vunpack.c.h.bf16 %v3834_v24 }
  0x85   : > { %v2423_v14 = vadd.f32 %v2391_v42, %v2286_v2  ;;  %v1876_v12 = vadd.f32 %v1844_v61, %v1739_v5  ;;  %v1466_v15 = vmul.f32 %v3252_v7, %v4387_v16  ;;  %v3380_v21 = vunpack.c.h.bf16 %v3850_v27  ;;  %v3883_v42 = vld [vmem:[%s4409_s20 + $0x218] sm:$0xff]  }
  0x86   : > { %v3211_v22 = vpack.c.bf16 %v2637_v8, %v2637_v8  ;;  %v1571_v23 = vmul.f32 %v3316_v11, %v4392_v17  ;;  %v3444_v25 = vunpack.c.h.bf16 %v3866_v28  ;;  %v3508_v13 = vunpack.c.h.bf16 %v3882_v34  ;;  %v4602_v7 = vld [vmem:[%s4409_s20 + $0x398] sm:$0xff]  }
  0x87   : > { %v2560_v26 = vadd.f32 %v2528_v3, %v2423_v14  ;;  %v2013_v29 = vadd.f32 %v1981_v4, %v1876_v12  ;;  %v1708_v30 = vmul.f32 %v3380_v21, %v4397_v18  ;;  %v3572_v31 = vunpack.c.h.bf16 %v3898_v39  ;;  %v4612_v21 = vld [vmem:[%s4409_s20 + $0x418] sm:$0xff]  }
  0x88   : > { %2798 = vst.msk [vmem:[%s4535_s10 + $0x8] sm:$0xf] %vm2795_vm0, %v3211_v22  ;;  %v2392_v24 = vmul.f32 %v3699_v6, %v4443_v51  ;;  %v1603_v35 = vadd.f32 %v1571_v23, %v1466_v15  ;;  %v1845_v27 = vmul.f32 %v3444_v25, %v4402_v19  ;;  %v3636_v36 = vunpack.c.h.bf16 %v3914_v46 }
  0x89   : > { %v2599_v28 = vmul.f32 %v4508_v54, %v2560_v26  ;;  %v2150_v34 = vadd.f32 %v2118_v1, %v2013_v29  ;;  %v2529_v38 = vmul.f32 %v3763_v10, %v4448_v52  ;;  %v1982_v39 = vmul.f32 %v3508_v13, %v4407_v20 }
  0x8a   : > { %v1740_v40 = vadd.f32 %v1708_v30, %v1603_v35  ;;  %v2119_v43 = vmul.f32 %v3572_v31, %v4428_v41  ;;  %v3700_v44 = vunpack.c.h.bf16 %v4555_v57  ;;  %v3255_v47 = vunpack.c.l.bf16 %v3819_v33  ;;  %v4596_v57 = vld [vmem:[%s4409_s20 + $0x318] sm:$0xff]  }
  0x8b   : > { %v2638_v46 = vadd.f32 %v4516_v60, %v2599_v28  ;;  %v2287_v49 = vadd.f32 %v2255_v9, %v2150_v34  ;;  %v2256_v50 = vmul.f32 %v3636_v36, %v4435_v45  ;;  %v3319_v53 = vunpack.c.l.bf16 %v3835_v37 }
  0x8c   : > { %v1877_v56 = vadd.f32 %v1845_v27, %v1740_v40  ;;  %v3764_v58 = vunpack.c.h.bf16 %v4561_v63  ;;  %v1467_v59 = vmul.f32 %v3255_v47, %v4387_v16  ;;  %v3383_v61 = vunpack.c.l.bf16 %v3851_v32 }
  0x8d   : > { %v3212_v62 = vpack.c.bf16 %v2638_v46, %v2638_v46  ;;  %v2424_v0 = vadd.f32 %v2392_v24, %v2287_v49  ;;  %v1572_v3 = vmul.f32 %v3319_v53, %v4392_v17  ;;  %v3447_v4 = vunpack.c.l.bf16 %v3867_v48  ;;  %v3820_v49 = vld [vmem:[%s4409_s20 + $0x20] sm:$0xff]  }
  0x8e   : > { %v2014_v1 = vadd.f32 %v1982_v39, %v1877_v56  ;;  %v1709_v2 = vmul.f32 %v3383_v61, %v4397_v18  ;;  %v3511_v5 = vunpack.c.l.bf16 %v3883_v42  ;;  %v3575_v6 = vunpack.c.l.bf16 %v4591_v55 }
  0x8f   : > { %2799 = vst.msk [vmem:[%s4535_s10 + $0xc] sm:$0xf] %vm2795_vm0, %v3212_v62  ;;  %v2561_v63 = vadd.f32 %v2529_v38, %v2424_v0  ;;  %v1604_v8 = vadd.f32 %v1572_v3, %v1467_v59  ;;  %v1846_v9 = vmul.f32 %v3447_v4, %v4402_v19  ;;  %v3639_v10 = vunpack.c.l.bf16 %v4596_v57  ;;  %v3852_v62 = vld [vmem:[%s4409_s20 + $0x120] sm:$0xff]  }
  0x90   : > { %v2151_v11 = vadd.f32 %v2119_v43, %v2014_v1  ;;  %v2393_v14 = vmul.f32 %v3700_v44, %v4443_v51  ;;  %v2530_v12 = vmul.f32 %v3764_v58, %v4448_v52  ;;  %v1983_v15 = vmul.f32 %v3511_v5, %v4407_v20  ;;  %v3868_v0 = vld [vmem:[%s4409_s20 + $0x1a0] sm:$0xff]  }
  0x91   : > { %v2600_v22 = vmul.f32 %v4508_v54, %v2561_v63  ;;  %v1741_v23 = vadd.f32 %v1709_v2, %v1604_v8  ;;  %v2120_v25 = vmul.f32 %v3575_v6, %v4428_v41  ;;  %v3703_v13 = vunpack.c.l.bf16 %v4602_v7  ;;  %v3884_v5 = vld [vmem:[%s4409_s20 + $0x220] sm:$0xff]  }
  0x92   : > { %v2288_v26 = vadd.f32 %v2256_v50, %v2151_v11  ;;  %v2257_v29 = vmul.f32 %v3639_v10, %v4435_v45  ;;  %v3256_v30 = vunpack.c.h.bf16 %v3819_v33  ;;  %v3320_v31 = vunpack.c.h.bf16 %v3835_v37 }
  0x93   : > { %v2639_v24 = vadd.f32 %v4516_v60, %v2600_v22  ;;  %v1878_v35 = vadd.f32 %v1846_v9, %v1741_v23  ;;  %v3767_v27 = vunpack.c.l.bf16 %v4612_v21  ;;  %v3384_v36 = vunpack.c.h.bf16 %v3851_v32  ;;  %v3900_v9 = vld [vmem:[%s4409_s20 + $0x2a0] sm:$0xff]  }
  0x94   : > { %v2425_v28 = vadd.f32 %v2393_v14, %v2288_v26  ;;  %v1468_v34 = vmul.f32 %v3256_v30, %v4387_v16  ;;  %v1573_v38 = vmul.f32 %v3320_v31, %v4392_v17  ;;  %v3448_v39 = vunpack.c.h.bf16 %v3867_v48  ;;  %v4649_v30 = vld [vmem:[%s4409_s20 + $0x3a0] sm:$0xff]  }
  0x95   : > { %v3213_v40 = vpack.c.bf16 %v2639_v24, %v2639_v24  ;;  %v2015_v43 = vadd.f32 %v1983_v15, %v1878_v35  ;;  %v1710_v33 = vmul.f32 %v3384_v36, %v4397_v18  ;;  %v3512_v37 = vunpack.c.h.bf16 %v3883_v42  ;;  %v3836_v42 = vld [vmem:[%s4409_s20 + $0xa0] sm:$0xff]  }
  0x96   : > { %v2562_v44 = vadd.f32 %v2530_v12, %v2425_v28  ;;  %v1605_v47 = vadd.f32 %v1573_v38, %v1468_v34  ;;  %v1847_v46 = vmul.f32 %v3448_v39, %v4402_v19  ;;  %v3576_v32 = vunpack.c.h.bf16 %v4591_v55  ;;  %v3916_v12 = vld [vmem:[%s4409_s20 + $0x320] sm:$0xff]  }
  0x97   : > { %2800 = vst.msk [vmem:[%s4535_s10 + $0x10] sm:$0xf] %vm2795_vm0, %v3213_v40  ;;  %v2152_v50 = vadd.f32 %v2120_v25, %v2015_v43  ;;  %v2394_v48 = vmul.f32 %v3703_v13, %v4443_v51  ;;  %v2531_v53 = vmul.f32 %v3767_v27, %v4448_v52  ;;  %v3640_v56 = vunpack.c.h.bf16 %v4596_v57  ;;  %v4655_v36 = vld [vmem:[%s4409_s20 + $0x420] sm:$0xff]  }
  0x98   : > { %v2601_v58 = vmul.f32 %v4508_v54, %v2562_v44  ;;  %v1742_v59 = vadd.f32 %v1710_v33, %v1605_v47  ;;  %v1984_v61 = vmul.f32 %v3512_v37, %v4407_v20  ;;  %v3704_v55 = vunpack.c.h.bf16 %v4602_v7 }
  0x99   : > { %v2289_v3 = vadd.f32 %v2257_v29, %v2152_v50  ;;  %v2121_v4 = vmul.f32 %v3576_v32, %v4428_v41  ;;  %v3768_v1 = vunpack.c.h.bf16 %v4612_v21  ;;  %v3259_v2 = vunpack.c.l.bf16 %v3820_v49 }
  0x9a   : > { %v2640_v57 = vadd.f32 %v4516_v60, %v2601_v58  ;;  %v1879_v6 = vadd.f32 %v1847_v46, %v1742_v59  ;;  %v2258_v63 = vmul.f32 %v3640_v56, %v4435_v45  ;;  %v3323_v8 = vunpack.c.l.bf16 %v3836_v42 }
  0x9b   : > { %v2426_v7 = vadd.f32 %v2394_v48, %v2289_v3  ;;  %v1469_v10 = vmul.f32 %v3259_v2, %v4387_v16  ;;  %v3387_v11 = vunpack.c.l.bf16 %v3852_v62  ;;  %v3451_v14 = vunpack.c.l.bf16 %v3868_v0  ;;  %v3821_v2 = vld [vmem:[%s4409_s20 + $0x28] sm:$0xff]  }
  0x9c   : > { %v3214_v15 = vpack.c.bf16 %v2640_v57, %v2640_v57  ;;  %v2016_v21 = vadd.f32 %v1984_v61, %v1879_v6  ;;  %v1574_v22 = vmul.f32 %v3323_v8, %v4392_v17  ;;  %v3515_v23 = vunpack.c.l.bf16 %v3884_v5 }
  0x9d   : > { %v2563_v25 = vadd.f32 %v2531_v53, %v2426_v7  ;;  %v2395_v13 = vmul.f32 %v3704_v55, %v4443_v51  ;;  %v1711_v26 = vmul.f32 %v3387_v11, %v4397_v18  ;;  %v3579_v29 = vunpack.c.l.bf16 %v3900_v9  ;;  %v3853_v7 = vld [vmem:[%s4409_s20 + $0x128] sm:$0xff]  }
  0x9e   : > { %2801 = vst.msk [vmem:[%s4535_s10 + $0x14] sm:$0xf] %vm2795_vm0, %v3214_v15  ;;  %v2153_v31 = vadd.f32 %v2121_v4, %v2016_v21  ;;  %v1606_v24 = vadd.f32 %v1574_v22, %v1469_v10  ;;  %v1848_v35 = vmul.f32 %v3451_v14, %v4402_v19  ;;  %v3643_v27 = vunpack.c.l.bf16 %v3916_v12  ;;  %v3869_v21 = vld [vmem:[%s4409_s20 + $0x1a8] sm:$0xff]  }
  0x9f   : > { %v2602_v28 = vmul.f32 %v4508_v54, %v2563_v25  ;;  %v2532_v34 = vmul.f32 %v3768_v1, %v4448_v52  ;;  %v1985_v38 = vmul.f32 %v3515_v23, %v4407_v20  ;;  %v2122_v39 = vmul.f32 %v3579_v29, %v4428_v41 }
  0xa0   : > { %v2290_v40 = vadd.f32 %v2258_v63, %v2153_v31  ;;  %v1743_v43 = vadd.f32 %v1711_v26, %v1606_v24  ;;  %v3707_v33 = vunpack.c.l.bf16 %v4649_v30  ;;  %v3260_v37 = vunpack.c.h.bf16 %v3820_v49  ;;  %v3837_v63 = vld [vmem:[%s4409_s20 + $0xa8] sm:$0xff]  }
  0xa1   : > { %v2641_v44 = vadd.f32 %v4516_v60, %v2602_v28  ;;  %v2259_v47 = vmul.f32 %v3643_v27, %v4435_v45  ;;  %v3771_v46 = vunpack.c.l.bf16 %v4655_v36  ;;  %v3324_v32 = vunpack.c.h.bf16 %v3836_v42  ;;  %v4685_v26 = vld [vmem:[%s4409_s20 + $0x2a8] sm:$0xff]  }
  0xa2   : > { %v2427_v50 = vadd.f32 %v2395_v13, %v2290_v40  ;;  %v1880_v48 = vadd.f32 %v1848_v35, %v1743_v43  ;;  %v1470_v53 = vmul.f32 %v3260_v37, %v4387_v16  ;;  %v3388_v56 = vunpack.c.h.bf16 %v3852_v62  ;;  %v3885_v13 = vld [vmem:[%s4409_s20 + $0x228] sm:$0xff]  }
  0xa3   : > { %v3215_v58 = vpack.c.bf16 %v2641_v44, %v2641_v44  ;;  %v1575_v59 = vmul.f32 %v3324_v32, %v4392_v17  ;;  %v3452_v61 = vunpack.c.h.bf16 %v3868_v0  ;;  %v3516_v49 = vunpack.c.h.bf16 %v3884_v5  ;;  %v4696_v37 = vld [vmem:[%s4409_s20 + $0x3a8] sm:$0xff]  }
  0xa4   : > { %v2564_v55 = vadd.f32 %v2532_v34, %v2427_v50  ;;  %v2017_v3 = vadd.f32 %v1985_v38, %v1880_v48  ;;  %v1712_v4 = vmul.f32 %v3388_v56, %v4397_v18  ;;  %v3580_v1 = vunpack.c.h.bf16 %v3900_v9  ;;  %v4706_v56 = vld [vmem:[%s4409_s20 + $0x428] sm:$0xff]  }
  0xa5   : > { %2802 = vst.msk [vmem:[%s4535_s10 + $0x18] sm:$0xf] %vm2795_vm0, %v3215_v58  ;;  %v2396_v42 = vmul.f32 %v3707_v33, %v4443_v51  ;;  %v1607_v57 = vadd.f32 %v1575_v59, %v1470_v53  ;;  %v1849_v62 = vmul.f32 %v3452_v61, %v4402_v19  ;;  %v3644_v6 = vunpack.c.h.bf16 %v3916_v12 }
  0xa6   : > { %v2603_v0 = vmul.f32 %v4508_v54, %v2564_v55  ;;  %v2154_v5 = vadd.f32 %v2122_v39, %v2017_v3  ;;  %v2533_v8 = vmul.f32 %v3771_v46, %v4448_v52  ;;  %v1986_v9 = vmul.f32 %v3516_v49, %v4407_v20 }
  0xa7   : > { %v1744_v10 = vadd.f32 %v1712_v4, %v1607_v57  ;;  %v2123_v11 = vmul.f32 %v3580_v1, %v4428_v41  ;;  %v3708_v14 = vunpack.c.h.bf16 %v4649_v30  ;;  %v3263_v15 = vunpack.c.l.bf16 %v3821_v2  ;;  %v4690_v30 = vld [vmem:[%s4409_s20 + $0x328] sm:$0xff]  }
  0xa8   : > { %v2642_v12 = vadd.f32 %v4516_v60, %v2603_v0  ;;  %v2291_v22 = vadd.f32 %v2259_v47, %v2154_v5  ;;  %v2260_v23 = vmul.f32 %v3644_v6, %v4435_v45  ;;  %v3327_v25 = vunpack.c.l.bf16 %v3837_v63 }
  0xa9   : > { %v1881_v29 = vadd.f32 %v1849_v62, %v1744_v10  ;;  %v3772_v31 = vunpack.c.h.bf16 %v4655_v36  ;;  %v1471_v24 = vmul.f32 %v3263_v15, %v4387_v16  ;;  %v3391_v35 = vunpack.c.l.bf16 %v3853_v7 }
  0xaa   : > { %v3216_v27 = vpack.c.bf16 %v2642_v12, %v2642_v12  ;;  %v2428_v28 = vadd.f32 %v2396_v42, %v2291_v22  ;;  %v1576_v34 = vmul.f32 %v3327_v25, %v4392_v17  ;;  %v3455_v38 = vunpack.c.l.bf16 %v3869_v21  ;;  %v3822_v22 = vld [vmem:[%s4409_s20 + $0x30] sm:$0xff]  }
  0xab   : > { %v2018_v39 = vadd.f32 %v1986_v9, %v1881_v29  ;;  %v1713_v40 = vmul.f32 %v3391_v35, %v4397_v18  ;;  %v3519_v43 = vunpack.c.l.bf16 %v3885_v13  ;;  %v3583_v33 = vunpack.c.l.bf16 %v4685_v26 }
  0xac   : > { %2803 = vst.msk [vmem:[%s4535_s10 + $0x1c] sm:$0xf] %vm2795_vm0, %v3216_v27  ;;  %v2565_v36 = vadd.f32 %v2533_v8, %v2428_v28  ;;  %v1608_v44 = vadd.f32 %v1576_v34, %v1471_v24  ;;  %v1850_v47 = vmul.f32 %v3455_v38, %v4402_v19  ;;  %v3647_v46 = vunpack.c.l.bf16 %v4690_v30  ;;  %v3854_v27 = vld [vmem:[%s4409_s20 + $0x130] sm:$0xff]  }
  0xad   : > { %v2155_v32 = vadd.f32 %v2123_v11, %v2018_v39  ;;  %v2397_v50 = vmul.f32 %v3708_v14, %v4443_v51  ;;  %v2534_v48 = vmul.f32 %v3772_v31, %v4448_v52  ;;  %v1987_v53 = vmul.f32 %v3519_v43, %v4407_v20  ;;  %v3870_v28 = vld [vmem:[%s4409_s20 + $0x1b0] sm:$0xff]  }
  0xae   : > { %v2604_v58 = vmul.f32 %v4508_v54, %v2565_v36  ;;  %v1745_v59 = vadd.f32 %v1713_v40, %v1608_v44  ;;  %v2124_v61 = vmul.f32 %v3583_v33, %v4428_v41  ;;  %v3711_v49 = vunpack.c.l.bf16 %v4696_v37  ;;  %v3886_v43 = vld [vmem:[%s4409_s20 + $0x230] sm:$0xff]  }
  0xaf   : > { %v2292_v55 = vadd.f32 %v2260_v23, %v2155_v32  ;;  %v2261_v3 = vmul.f32 %v3647_v46, %v4435_v45  ;;  %v3264_v4 = vunpack.c.h.bf16 %v3821_v2  ;;  %v3328_v1 = vunpack.c.h.bf16 %v3837_v63 }
  0xb0   : > { %v2643_v42 = vadd.f32 %v4516_v60, %v2604_v58  ;;  %v1882_v57 = vadd.f32 %v1850_v47, %v1745_v59  ;;  %v3775_v62 = vunpack.c.l.bf16 %v4706_v56  ;;  %v3392_v6 = vunpack.c.h.bf16 %v3853_v7  ;;  %v3902_v47 = vld [vmem:[%s4409_s20 + $0x2b0] sm:$0xff]  }
  0xb1   : > { %v2429_v0 = vadd.f32 %v2397_v50, %v2292_v55  ;;  %v1472_v5 = vmul.f32 %v3264_v4, %v4387_v16  ;;  %v1577_v8 = vmul.f32 %v3328_v1, %v4392_v17  ;;  %v3456_v9 = vunpack.c.h.bf16 %v3869_v21  ;;  %v4743_v4 = vld [vmem:[%s4409_s20 + $0x3b0] sm:$0xff]  }
  0xb2   : > { %v3217_v10 = vpack.c.bf16 %v2643_v42, %v2643_v42  ;;  %v2019_v11 = vadd.f32 %v1987_v53, %v1882_v57  ;;  %v1714_v2 = vmul.f32 %v3392_v6, %v4397_v18  ;;  %v3520_v63 = vunpack.c.h.bf16 %v3885_v13  ;;  %v3838_v13 = vld [vmem:[%s4409_s20 + $0xb0] sm:$0xff]  }
  0xb3   : > { %v2566_v14 = vadd.f32 %v2534_v48, %v2429_v0  ;;  %v1609_v15 = vadd.f32 %v1577_v8, %v1472_v5  ;;  %v1851_v12 = vmul.f32 %v3456_v9, %v4402_v19  ;;  %v3584_v7 = vunpack.c.h.bf16 %v4685_v26  ;;  %v3918_v48 = vld [vmem:[%s4409_s20 + $0x330] sm:$0xff]  }
  0xb4   : > { %2804 = vst.msk [vmem:[%s4535_s10 + $0x20] sm:$0xf] %vm2795_vm0, %v3217_v10  ;;  %v2156_v23 = vadd.f32 %v2124_v61, %v2019_v11  ;;  %v2398_v21 = vmul.f32 %v3711_v49, %v4443_v51  ;;  %v2535_v25 = vmul.f32 %v3775_v62, %v4448_v52  ;;  %v3648_v29 = vunpack.c.h.bf16 %v4690_v30  ;;  %v4749_v6 = vld [vmem:[%s4409_s20 + $0x430] sm:$0xff]  }
  0xb5   : > { %v2605_v31 = vmul.f32 %v4508_v54, %v2566_v14  ;;  %v1746_v24 = vadd.f32 %v1714_v2, %v1609_v15  ;;  %v1988_v35 = vmul.f32 %v3520_v63, %v4407_v20  ;;  %v3712_v26 = vunpack.c.h.bf16 %v4696_v37 }
  0xb6   : > { %v2293_v34 = vadd.f32 %v2261_v3, %v2156_v23  ;;  %v2125_v38 = vmul.f32 %v3584_v7, %v4428_v41  ;;  %v3776_v39 = vunpack.c.h.bf16 %v4706_v56  ;;  %v3267_v40 = vunpack.c.l.bf16 %v3822_v22 }
  0xb7   : > { %v2644_v30 = vadd.f32 %v4516_v60, %v2605_v31  ;;  %v1883_v33 = vadd.f32 %v1851_v12, %v1746_v24  ;;  %v2262_v36 = vmul.f32 %v3648_v29, %v4435_v45  ;;  %v3331_v44 = vunpack.c.l.bf16 %v3838_v13 }
  0xb8   : > { %v2430_v37 = vadd.f32 %v2398_v21, %v2293_v34  ;;  %v1473_v46 = vmul.f32 %v3267_v40, %v4387_v16  ;;  %v3395_v32 = vunpack.c.l.bf16 %v3854_v27  ;;  %v3459_v50 = vunpack.c.l.bf16 %v3870_v28  ;;  %v3823_v40 = vld [vmem:[%s4409_s20 + $0x38] sm:$0xff]  }
  0xb9   : > { %v3218_v53 = vpack.c.bf16 %v2644_v30, %v2644_v30  ;;  %v2020_v56 = vadd.f32 %v1988_v35, %v1883_v33  ;;  %v1578_v58 = vmul.f32 %v3331_v44, %v4392_v17  ;;  %v3523_v59 = vunpack.c.l.bf16 %v3886_v43 }
  0xba   : > { %v2567_v61 = vadd.f32 %v2535_v25, %v2430_v37  ;;  %v2399_v49 = vmul.f32 %v3712_v26, %v4443_v51  ;;  %v1715_v55 = vmul.f32 %v3395_v32, %v4397_v18  ;;  %v3587_v3 = vunpack.c.l.bf16 %v3902_v47  ;;  %v3855_v37 = vld [vmem:[%s4409_s20 + $0x138] sm:$0xff]  }
  0xbb   : > { %2805 = vst.msk [vmem:[%s4535_s10 + $0x24] sm:$0xf] %vm2795_vm0, %v3218_v53  ;;  %v2157_v1 = vadd.f32 %v2125_v38, %v2020_v56  ;;  %v1610_v42 = vadd.f32 %v1578_v58, %v1473_v46  ;;  %v1852_v57 = vmul.f32 %v3459_v50, %v4402_v19  ;;  %v3651_v62 = vunpack.c.l.bf16 %v3918_v48  ;;  %v3871_v56 = vld [vmem:[%s4409_s20 + $0x1b8] sm:$0xff]  }
  0xbc   : > { %v2606_v0 = vmul.f32 %v4508_v54, %v2567_v61  ;;  %v2536_v5 = vmul.f32 %v3776_v39, %v4448_v52  ;;  %v1989_v8 = vmul.f32 %v3523_v59, %v4407_v20  ;;  %v2126_v9 = vmul.f32 %v3587_v3, %v4428_v41 }
  0xbd   : > { %v2294_v10 = vadd.f32 %v2262_v36, %v2157_v1  ;;  %v1747_v11 = vadd.f32 %v1715_v55, %v1610_v42  ;;  %v3715_v2 = vunpack.c.l.bf16 %v4743_v4  ;;  %v3268_v63 = vunpack.c.h.bf16 %v3822_v22  ;;  %v3839_v36 = vld [vmem:[%s4409_s20 + $0xb8] sm:$0xff]  }
  0xbe   : > { %v2645_v14 = vadd.f32 %v4516_v60, %v2606_v0  ;;  %v2263_v15 = vmul.f32 %v3651_v62, %v4435_v45  ;;  %v3779_v12 = vunpack.c.l.bf16 %v4749_v6  ;;  %v3332_v7 = vunpack.c.h.bf16 %v3838_v13  ;;  %v4781_v55 = vld [vmem:[%s4409_s20 + $0x2b8] sm:$0xff]  }
  0xbf   : > { %v2431_v23 = vadd.f32 %v2399_v49, %v2294_v10  ;;  %v1884_v21 = vadd.f32 %v1852_v57, %v1747_v11  ;;  %v1474_v25 = vmul.f32 %v3268_v63, %v4387_v16  ;;  %v3396_v29 = vunpack.c.h.bf16 %v3854_v27  ;;  %v4778_v49 = vld [vmem:[%s4409_s20 + $0x238] sm:$0xff]  }
  0xc0   : > { %v3219_v31 = vpack.c.bf16 %v2645_v14, %v2645_v14  ;;  %v1579_v24 = vmul.f32 %v3332_v7, %v4392_v17  ;;  %v3460_v35 = vunpack.c.h.bf16 %v3870_v28  ;;  %v3524_v22 = vunpack.c.h.bf16 %v3886_v43  ;;  %v4786_v57 = vld [vmem:[%s4409_s20 + $0x338] sm:$0xff]  }
  0xc1   : > { %v2568_v26 = vadd.f32 %v2536_v5, %v2431_v23  ;;  %v2021_v34 = vadd.f32 %v1989_v8, %v1884_v21  ;;  %v1716_v38 = vmul.f32 %v3396_v29, %v4397_v18  ;;  %v3588_v39 = vunpack.c.h.bf16 %v3902_v47  ;;  %v4793_v63 = vld [vmem:[%s4409_s20 + $0x3b8] sm:$0xff]  }
  0xc2   : > { %2806 = vst.msk [vmem:[%s4535_s10 + $0x28] sm:$0xf] %vm2795_vm0, %v3219_v31  ;;  %v2400_v13 = vmul.f32 %v3715_v2, %v4443_v51  ;;  %v1611_v30 = vadd.f32 %v1579_v24, %v1474_v25  ;;  %v1853_v27 = vmul.f32 %v3460_v35, %v4402_v19  ;;  %v3652_v33 = vunpack.c.h.bf16 %v3918_v48  ;;  %v4803_v23 = vld [vmem:[%s4409_s20 + $0x438] sm:$0xff]  }
  0xc3   : > { %v2607_v28 = vmul.f32 %v4508_v54, %v2568_v26  ;;  %v2158_v43 = vadd.f32 %v2126_v9, %v2021_v34  ;;  %v2537_v44 = vmul.f32 %v3779_v12, %v4448_v52  ;;  %v1990_v47 = vmul.f32 %v3524_v22, %v4407_v20 }
  0xc4   : > { %v1748_v46 = vadd.f32 %v1716_v38, %v1611_v30  ;;  %v2127_v32 = vmul.f32 %v3588_v39, %v4428_v41  ;;  %v3716_v50 = vunpack.c.h.bf16 %v4743_v4  ;;  %v3271_v53 = vunpack.c.l.bf16 %v3823_v40 }
  0xc5   : > { %v2646_v48 = vadd.f32 %v4516_v60, %v2607_v28  ;;  %v2295_v58 = vadd.f32 %v2263_v15, %v2158_v43  ;;  %v2264_v59 = vmul.f32 %v3652_v33, %v4435_v45  ;;  %v3335_v61 = vunpack.c.l.bf16 %v3839_v36 }
  0xc6   : > { %v1885_v3 = vadd.f32 %v1853_v27, %v1748_v46  ;;  %v3780_v1 = vunpack.c.h.bf16 %v4749_v6  ;;  %v1475_v42 = vmul.f32 %v3271_v53, %v4387_v16  ;;  %v3399_v4 = vunpack.c.l.bf16 %v3855_v37 }
  0xc7   : > { %v3220_v62 = vpack.c.bf16 %v2646_v48, %v2646_v48  ;;  %v2432_v0 = vadd.f32 %v2400_v13, %v2295_v58  ;;  %v1580_v5 = vmul.f32 %v3335_v61, %v4392_v17  ;;  %v3463_v8 = vunpack.c.l.bf16 %v3871_v56  ;;  %v4814_v13 = vld [vmem:[%s5320_s1] ss:$0 sm:$0xff] }
  0xc8   : > { %v2022_v9 = vadd.f32 %v1990_v47, %v1885_v3  ;;  %v1717_v10 = vmul.f32 %v3399_v4, %v4397_v18  ;;  %v3527_v11 = vunpack.c.l.bf16 %v4778_v49  ;;  %v3591_v2 = vunpack.c.l.bf16 %v4781_v55  ;;  %v4861_v4 = vld [vmem:[%s5320_s1 + $0x5] ss:$0 sm:$0xff] }
  0xc9   : > { %2807 = vst.msk [vmem:[%s4535_s10 + $0x2c] sm:$0xf] %vm2795_vm0, %v3220_v62  ;;  %v2569_v16 = vadd.f32 %v2537_v44, %v2432_v0  ;;  %v1612_v6 = vadd.f32 %v1580_v5, %v1475_v42  ;;  %v1854_v14 = vmul.f32 %v3463_v8, %v4402_v19  ;;  %v3655_v15 = vunpack.c.l.bf16 %v4786_v57  ;;  %v4856_v42 = vld [vmem:[%s4409_s20 + $0x1c0] sm:$0xff]  }
  0xca   : > { %v2159_v17 = vadd.f32 %v2127_v32, %v2022_v9  ;;  %v2401_v12 = vmul.f32 %v3716_v50, %v4443_v51  ;;  %v2538_v7 = vmul.f32 %v3780_v1, %v4448_v52  ;;  %v1991_v18 = vmul.f32 %v3527_v11, %v4407_v20  ;;  %v4838_v50 = vld [vmem:[%s4409_s20 + $0x40] sm:$0xff]  }
  0xcb   : > { %v2608_v21 = vmul.f32 %v4508_v54, %v2569_v16  ;;  %v1749_v25 = vadd.f32 %v1717_v10, %v1612_v6  ;;  %v2128_v29 = vmul.f32 %v3591_v2, %v4428_v41  ;;  %v3719_v31 = vunpack.c.l.bf16 %v4793_v63  ;;  %v4867_v5 = vld [vmem:[%s4409_s20 + $0x240] sm:$0xff]  }
  0xcc   : > { %v2296_v24 = vadd.f32 %v2264_v59, %v2159_v17  ;;  %v2265_v19 = vmul.f32 %v3655_v15, %v4435_v45  ;;  %v3272_v35 = vunpack.c.h.bf16 %v3823_v40  ;;  %v3336_v22 = vunpack.c.h.bf16 %v3839_v36  ;;  %v4820_v45 = vld [vmem:[%s5320_s1 + $0x1] ss:$0 sm:$0xff]  ;;  %v4826_v36 = vld [vmem:[%s5320_s1 + $0x2] ss:$0 sm:$0xff]  ;;  %v4873_v10 = vld [vmem:[%s5320_s1 + $0x6] ss:$0 sm:$0xff] }
  0xcd   : > { %v2647_v26 = vadd.f32 %v4516_v60, %v2608_v21  ;;  %v1886_v34 = vadd.f32 %v1854_v14, %v1749_v25  ;;  %v3783_v38 = vunpack.c.l.bf16 %v4803_v23  ;;  %v3400_v20 = vunpack.c.h.bf16 %v3855_v37  ;;  %v4833_v37 = vld [vmem:[%s5320_s1 + $0x3] ss:$0 sm:$0xff]  ;;  %v4887_v25 = vld [vmem:[%s5320_s1 + $0x7] ss:$0 sm:$0xff] }
  0xce   : > { %v2433_v39 = vadd.f32 %v2401_v12, %v2296_v24  ;;  %v1476_v41 = vmul.f32 %v4814_v13, %v3272_v35  ;;  %v1581_v40 = vmul.f32 %v4820_v45, %v3336_v22  ;;  %v3464_v30 = vunpack.c.h.bf16 %v3871_v56  ;;  %v3840_v59 = vld [vmem:[%s4409_s20 + $0xc0] sm:$0xff]  }
  0xcf   : > { %v3221_v27 = vpack.c.bf16 %v2647_v26, %v2647_v26  ;;  %v2023_v33 = vadd.f32 %v1991_v18, %v1886_v34  ;;  %v1718_v28 = vmul.f32 %v4826_v36, %v3400_v20  ;;  %v3528_v43 = vunpack.c.h.bf16 %v4778_v49  ;;  %v4880_v17 = vld [vmem:[%s4409_s20 + $0x340] sm:$0xff]  }
  0xd0   : > { %v2570_v44 = vadd.f32 %v2538_v7, %v2433_v39  ;;  %v1613_v47 = vadd.f32 %v1581_v40, %v1476_v41  ;;  %v1855_v46 = vmul.f32 %v4833_v37, %v3464_v30  ;;  %v3592_v32 = vunpack.c.h.bf16 %v4781_v55  ;;  %v4850_v55 = vld [vmem:[%s5320_s1 + $0x4] ss:$0 sm:$0xff]  ;;  %v4905_v39 = vld [vmem:[%s5320_s1 + $0x8] ss:$0 sm:$0xff] }
  0xd1   : > { %2808 = vst.msk [vmem:[%s4535_s10 + $0x30] sm:$0xf] %vm2795_vm0, %v3221_v27  ;;  %v2160_v53 = vadd.f32 %v2128_v29, %v2023_v33  ;;  %v2402_v56 = vmul.f32 %v3719_v31, %v4443_v51  ;;  %v2539_v48 = vmul.f32 %v3783_v38, %v4448_v52  ;;  %v3656_v58 = vunpack.c.h.bf16 %v4786_v57  ;;  %v3856_v51 = vld [vmem:[%s4409_s20 + $0x140] sm:$0xff]  }
  0xd2   : > { %v2609_v61 = vmul.f32 %v4508_v54, %v2570_v44  ;;  %v1750_v49 = vadd.f32 %v1718_v28, %v1613_v47  ;;  %v1992_v3 = vmul.f32 %v4850_v55, %v3528_v43  ;;  %v3720_v1 = vunpack.c.h.bf16 %v4793_v63  ;;  %v3904_v63 = vld [vmem:[%s4409_s20 + $0x2c0] sm:$0xff]  }
  0xd3   : > { %v2297_v52 = vadd.f32 %v2265_v19, %v2160_v53  ;;  %v2129_v57 = vmul.f32 %v4861_v4, %v3592_v32  ;;  %v3784_v62 = vunpack.c.h.bf16 %v4803_v23  ;;  %v3275_v0 = vunpack.c.l.bf16 %v4838_v50  ;;  %v4892_v19 = vld [vmem:[%s4409_s20 + $0x3c0] sm:$0xff]  }
  0xd4   : > { %v2648_v8 = vadd.f32 %v4516_v60, %v2609_v61  ;;  %v1887_v9 = vadd.f32 %v1855_v46, %v1750_v49  ;;  %v2266_v11 = vmul.f32 %v4873_v10, %v3656_v58  ;;  %v3339_v2 = vunpack.c.l.bf16 %v3840_v59  ;;  %v4899_v38 = vld [vmem:[%s4409_s20 + $0x440] sm:$0xff]  }
  0xd5   : > { %v2434_v16 = vadd.f32 %v2402_v56, %v2297_v52  ;;  %v1477_v6 = vmul.f32 %v4814_v13, %v3275_v0  ;;  %v3403_v14 = vunpack.c.l.bf16 %v3856_v51  ;;  %v3467_v15 = vunpack.c.l.bf16 %v4856_v42  ;;  %v3841_v0 = vld [vmem:[%s4409_s20 + $0xc8] sm:$0xff]  }
  0xd6   : > { %v3222_v12 = vpack.c.bf16 %v2648_v8, %v2648_v8  ;;  %v2024_v7 = vadd.f32 %v1992_v3, %v1887_v9  ;;  %v1582_v18 = vmul.f32 %v4820_v45, %v3339_v2  ;;  %v3531_v23 = vunpack.c.l.bf16 %v4867_v5 }
  0xd7   : > { %v2571_v21 = vadd.f32 %v2539_v48, %v2434_v16  ;;  %v2403_v29 = vmul.f32 %v4887_v25, %v3720_v1  ;;  %v1719_v31 = vmul.f32 %v4826_v36, %v3403_v14  ;;  %v3595_v24 = vunpack.c.l.bf16 %v3904_v63 }
  0xd8   : > { %2809 = vst.msk [vmem:[%s4535_s10 + $0x34] sm:$0xf] %vm2795_vm0, %v3222_v12  ;;  %v2161_v35 = vadd.f32 %v2129_v57, %v2024_v7  ;;  %v1614_v22 = vadd.f32 %v1582_v18, %v1477_v6  ;;  %v1856_v26 = vmul.f32 %v4833_v37, %v3467_v15  ;;  %v3659_v34 = vunpack.c.l.bf16 %v4880_v17  ;;  %v4945_v12 = vld [vmem:[%s5322_s3] ss:$0 sm:$0xff] }
  0xd9   : > { %v2610_v20 = vmul.f32 %v4508_v54, %v2571_v21  ;;  %v2540_v41 = vmul.f32 %v4905_v39, %v3784_v62  ;;  %v1993_v40 = vmul.f32 %v4850_v55, %v3531_v23  ;;  %v2130_v30 = vmul.f32 %v4861_v4, %v3595_v24 }
  0xda   : > { %v2298_v27 = vadd.f32 %v2266_v11, %v2161_v35  ;;  %v1751_v33 = vadd.f32 %v1719_v31, %v1614_v22  ;;  %v3723_v28 = vunpack.c.l.bf16 %v4892_v19  ;;  %v3276_v43 = vunpack.c.h.bf16 %v4838_v50  ;;  %v4951_v31 = vld [vmem:[%s4409_s20 + $0x2c8] sm:$0xff]  }
  0xdb   : > { %v2649_v44 = vadd.f32 %v4516_v60, %v2610_v20  ;;  %v2267_v54 = vmul.f32 %v4873_v10, %v3659_v34  ;;  %v3787_v47 = vunpack.c.l.bf16 %v4899_v38  ;;  %v3340_v46 = vunpack.c.h.bf16 %v3840_v59  ;;  %v4921_v59 = vld [vmem:[%s4409_s20 + $0x48] sm:$0xff]  }
  0xdc   : > { %v2435_v32 = vadd.f32 %v2403_v29, %v2298_v27  ;;  %v1888_v53 = vadd.f32 %v1856_v26, %v1751_v33  ;;  %v1478_v56 = vmul.f32 %v4814_v13, %v3276_v43  ;;  %v3404_v48 = vunpack.c.h.bf16 %v3856_v51  ;;  %v3889_v29 = vld [vmem:[%s4409_s20 + $0x248] sm:$0xff]  }
  0xdd   : > { %v3223_v58 = vpack.c.bf16 %v2649_v44, %v2649_v44  ;;  %v1583_v61 = vmul.f32 %v4820_v45, %v3340_v46  ;;  %v3468_v50 = vunpack.c.h.bf16 %v4856_v42  ;;  %v3532_v60 = vunpack.c.h.bf16 %v4867_v5  ;;  %v4932_v5 = vld [vmem:[%s5321_s2] ss:$0 sm:$0xff]  ;;  %v4956_v26 = vld [vmem:[%s4409_s20 + $0x348] sm:$0xff]  }
  0xde   : > { %v2572_v49 = vadd.f32 %v2540_v41, %v2435_v32  ;;  %v2025_v3 = vadd.f32 %v1993_v40, %v1888_v53  ;;  %v1720_v1 = vmul.f32 %v4826_v36, %v3404_v48  ;;  %v3596_v52 = vunpack.c.h.bf16 %v3904_v63  ;;  %v3857_v63 = vld [vmem:[%s4409_s20 + $0x148] sm:$0xff]  }
  0xdf   : > { %2810 = vst.msk [vmem:[%s4535_s10 + $0x38] sm:$0xf] %vm2795_vm0, %v3223_v58  ;;  %v2404_v51 = vmul.f32 %v4887_v25, %v3723_v28  ;;  %v1615_v57 = vadd.f32 %v1583_v61, %v1478_v56  ;;  %v1857_v62 = vmul.f32 %v4833_v37, %v3468_v50  ;;  %v3660_v42 = vunpack.c.h.bf16 %v4880_v17  ;;  %v3873_v17 = vld [vmem:[%s4409_s20 + $0x1c8] sm:$0xff]  }
  0xe0   : > { %v2611_v8 = vmul.f32 %v4932_v5, %v2572_v49  ;;  %v2162_v9 = vadd.f32 %v2130_v30, %v2025_v3  ;;  %v2541_v11 = vmul.f32 %v4905_v39, %v3787_v47  ;;  %v1994_v2 = vmul.f32 %v4850_v55, %v3532_v60  ;;  %v4962_v43 = vld [vmem:[%s4409_s20 + $0x3c8] sm:$0xff]  }
  0xe1   : > { %v1752_v16 = vadd.f32 %v1720_v1, %v1615_v57  ;;  %v2131_v6 = vmul.f32 %v4861_v4, %v3596_v52  ;;  %v3724_v14 = vunpack.c.h.bf16 %v4892_v19  ;;  %v3279_v15 = vunpack.c.l.bf16 %v4921_v59  ;;  %v4972_v48 = vld [vmem:[%s4409_s20 + $0x448] sm:$0xff]  }
  0xe2   : > { %v2650_v7 = vadd.f32 %v4945_v12, %v2611_v8  ;;  %v2299_v18 = vadd.f32 %v2267_v54, %v2162_v9  ;;  %v2268_v23 = vmul.f32 %v4873_v10, %v3660_v42  ;;  %v3343_v21 = vunpack.c.l.bf16 %v3841_v0 }
  0xe3   : > { %v1889_v24 = vadd.f32 %v1857_v62, %v1752_v16  ;;  %v3788_v19 = vunpack.c.h.bf16 %v4899_v38  ;;  %v1479_v35 = vmul.f32 %v4814_v13, %v3279_v15  ;;  %v3407_v22 = vunpack.c.l.bf16 %v3857_v63 }
  0xe4   : > { %v3224_v34 = vpack.c.bf16 %v2650_v7, %v2650_v7  ;;  %v2436_v20 = vadd.f32 %v2404_v51, %v2299_v18  ;;  %v1584_v41 = vmul.f32 %v4820_v45, %v3343_v21  ;;  %v3471_v40 = vunpack.c.l.bf16 %v3873_v17  ;;  %v3826_v18 = vld [vmem:[%s4409_s20 + $0x50] sm:$0xff]  }
  0xe5   : > { %v2026_v30 = vadd.f32 %v1994_v2, %v1889_v24  ;;  %v1721_v27 = vmul.f32 %v4826_v36, %v3407_v22  ;;  %v3535_v33 = vunpack.c.l.bf16 %v3889_v29  ;;  %v3599_v28 = vunpack.c.l.bf16 %v4951_v31 }
  0xe6   : > { %2811 = vst.msk [vmem:[%s4535_s10 + $0x3c] sm:$0xf] %vm2795_vm0, %v3224_v34  ;;  %v2573_v38 = vadd.f32 %v2541_v11, %v2436_v20  ;;  %v1616_v44 = vadd.f32 %v1584_v41, %v1479_v35  ;;  %v1858_v54 = vmul.f32 %v4833_v37, %v3471_v40  ;;  %v3663_v47 = vunpack.c.l.bf16 %v4956_v26  ;;  %v3858_v34 = vld [vmem:[%s4409_s20 + $0x150] sm:$0xff]  }
  0xe7   : > { %v2163_v46 = vadd.f32 %v2131_v6, %v2026_v30  ;;  %v2405_v32 = vmul.f32 %v4887_v25, %v3724_v14  ;;  %v2542_v53 = vmul.f32 %v4905_v39, %v3788_v19  ;;  %v1995_v56 = vmul.f32 %v4850_v55, %v3535_v33  ;;  %v3874_v20 = vld [vmem:[%s4409_s20 + $0x1d0] sm:$0xff]  }
  0xe8   : > { %v2612_v58 = vmul.f32 %v4932_v5, %v2573_v38  ;;  %v1753_v61 = vadd.f32 %v1721_v27, %v1616_v44  ;;  %v2132_v50 = vmul.f32 %v4861_v4, %v3599_v28  ;;  %v3727_v60 = vunpack.c.l.bf16 %v4962_v43  ;;  %v3890_v33 = vld [vmem:[%s4409_s20 + $0x250] sm:$0xff]  }
  0xe9   : > { %v2300_v49 = vadd.f32 %v2268_v23, %v2163_v46  ;;  %v2269_v3 = vmul.f32 %v4873_v10, %v3663_v47  ;;  %v3280_v1 = vunpack.c.h.bf16 %v4921_v59  ;;  %v3344_v52 = vunpack.c.h.bf16 %v3841_v0 }
  0xea   : > { %v2651_v51 = vadd.f32 %v4945_v12, %v2612_v58  ;;  %v1890_v57 = vadd.f32 %v1858_v54, %v1753_v61  ;;  %v3791_v62 = vunpack.c.l.bf16 %v4972_v48  ;;  %v3408_v42 = vunpack.c.h.bf16 %v3857_v63  ;;  %v3906_v54 = vld [vmem:[%s4409_s20 + $0x2d0] sm:$0xff]  }
  0xeb   : > { %v2437_v8 = vadd.f32 %v2405_v32, %v2300_v49  ;;  %v1480_v9 = vmul.f32 %v4814_v13, %v3280_v1  ;;  %v1585_v11 = vmul.f32 %v4820_v45, %v3344_v52  ;;  %v3472_v2 = vunpack.c.h.bf16 %v3873_v17  ;;  %v5010_v1 = vld [vmem:[%s4409_s20 + $0x3d0] sm:$0xff]  }
  0xec   : > { %v3225_v16 = vpack.c.bf16 %v2651_v51, %v2651_v51  ;;  %v2027_v6 = vadd.f32 %v1995_v56, %v1890_v57  ;;  %v1722_v59 = vmul.f32 %v4826_v36, %v3408_v42  ;;  %v3536_v0 = vunpack.c.h.bf16 %v3889_v29  ;;  %v3842_v29 = vld [vmem:[%s4409_s20 + $0xd0] sm:$0xff]  }
  0xed   : > { %v2574_v14 = vadd.f32 %v2542_v53, %v2437_v8  ;;  %v1617_v15 = vadd.f32 %v1585_v11, %v1480_v9  ;;  %v1859_v7 = vmul.f32 %v4833_v37, %v3472_v2  ;;  %v3600_v63 = vunpack.c.h.bf16 %v4951_v31  ;;  %v3922_v53 = vld [vmem:[%s4409_s20 + $0x350] sm:$0xff]  }
  0xee   : > { %2812 = vst.msk [vmem:[%s4535_s10 + $0x40] sm:$0xf] %vm2795_vm0, %v3225_v16  ;;  %v2164_v23 = vadd.f32 %v2132_v50, %v2027_v6  ;;  %v2406_v17 = vmul.f32 %v4887_v25, %v3727_v60  ;;  %v2543_v21 = vmul.f32 %v4905_v39, %v3791_v62  ;;  %v3664_v24 = vunpack.c.h.bf16 %v4956_v26  ;;  %v5016_v42 = vld [vmem:[%s4409_s20 + $0x450] sm:$0xff]  }
  0xef   : > { %v2613_v19 = vmul.f32 %v4932_v5, %v2574_v14  ;;  %v1754_v35 = vadd.f32 %v1722_v59, %v1617_v15  ;;  %v1996_v22 = vmul.f32 %v4850_v55, %v3536_v0  ;;  %v3728_v31 = vunpack.c.h.bf16 %v4962_v43 }
  0xf0   : > { %v2301_v41 = vadd.f32 %v2269_v3, %v2164_v23  ;;  %v2133_v40 = vmul.f32 %v4861_v4, %v3600_v63  ;;  %v3792_v30 = vunpack.c.h.bf16 %v4972_v48  ;;  %v3283_v27 = vunpack.c.l.bf16 %v3826_v18 }
  0xf1   : > { %v2652_v26 = vadd.f32 %v4945_v12, %v2613_v19  ;;  %v1891_v28 = vadd.f32 %v1859_v7, %v1754_v35  ;;  %v2270_v38 = vmul.f32 %v4873_v10, %v3664_v24  ;;  %v3347_v44 = vunpack.c.l.bf16 %v3842_v29 }
  0xf2   : > { %v2438_v43 = vadd.f32 %v2406_v17, %v2301_v41  ;;  %v1481_v47 = vmul.f32 %v4814_v13, %v3283_v27  ;;  %v3411_v46 = vunpack.c.l.bf16 %v3858_v34  ;;  %v3475_v32 = vunpack.c.l.bf16 %v3874_v20  ;;  %v3827_v27 = vld [vmem:[%s4409_s20 + $0x58] sm:$0xff]  }
  0xf3   : > { %v3226_v56 = vpack.c.bf16 %v2652_v26, %v2652_v26  ;;  %v2028_v48 = vadd.f32 %v1996_v22, %v1891_v28  ;;  %v1586_v58 = vmul.f32 %v4820_v45, %v3347_v44  ;;  %v3539_v61 = vunpack.c.l.bf16 %v3890_v33 }
  0xf4   : > { %v2575_v50 = vadd.f32 %v2543_v21, %v2438_v43  ;;  %v2407_v60 = vmul.f32 %v4887_v25, %v3728_v31  ;;  %v1723_v49 = vmul.f32 %v4826_v36, %v3411_v46  ;;  %v3603_v3 = vunpack.c.l.bf16 %v3906_v54  ;;  %v3859_v43 = vld [vmem:[%s4409_s20 + $0x158] sm:$0xff]  }
  0xf5   : > { %2813 = vst.msk [vmem:[%s4535_s10 + $0x44] sm:$0xf] %vm2795_vm0, %v3226_v56  ;;  %v2165_v52 = vadd.f32 %v2133_v40, %v2028_v48  ;;  %v1618_v51 = vadd.f32 %v1586_v58, %v1481_v47  ;;  %v1860_v57 = vmul.f32 %v4833_v37, %v3475_v32  ;;  %v3667_v62 = vunpack.c.l.bf16 %v3922_v53  ;;  %v3875_v48 = vld [vmem:[%s4409_s20 + $0x1d8] sm:$0xff]  }
  0xf6   : > { %v2614_v8 = vmul.f32 %v4932_v5, %v2575_v50  ;;  %v2544_v9 = vmul.f32 %v4905_v39, %v3792_v30  ;;  %v1997_v11 = vmul.f32 %v4850_v55, %v3539_v61  ;;  %v2134_v2 = vmul.f32 %v4861_v4, %v3603_v3 }
  0xf7   : > { %v2302_v16 = vadd.f32 %v2270_v38, %v2165_v52  ;;  %v1755_v6 = vadd.f32 %v1723_v49, %v1618_v51  ;;  %v3731_v59 = vunpack.c.l.bf16 %v5010_v1  ;;  %v3284_v0 = vunpack.c.h.bf16 %v3826_v18  ;;  %v3843_v38 = vld [vmem:[%s4409_s20 + $0xd8] sm:$0xff]  }
  0xf8   : > { %v2653_v14 = vadd.f32 %v4945_v12, %v2614_v8  ;;  %v2271_v15 = vmul.f32 %v4873_v10, %v3667_v62  ;;  %v3795_v7 = vunpack.c.l.bf16 %v5016_v42  ;;  %v3348_v63 = vunpack.c.h.bf16 %v3842_v29  ;;  %v5046_v49 = vld [vmem:[%s4409_s20 + $0x2d8] sm:$0xff]  }
  0xf9   : > { %v2439_v23 = vadd.f32 %v2407_v60, %v2302_v16  ;;  %v1892_v17 = vadd.f32 %v1860_v57, %v1755_v6  ;;  %v1482_v21 = vmul.f32 %v4814_v13, %v3284_v0  ;;  %v3412_v24 = vunpack.c.h.bf16 %v3858_v34  ;;  %v3891_v60 = vld [vmem:[%s4409_s20 + $0x258] sm:$0xff]  }
  0xfa   : > { %v3227_v19 = vpack.c.bf16 %v2653_v14, %v2653_v14  ;;  %v1587_v35 = vmul.f32 %v4820_v45, %v3348_v63  ;;  %v3476_v22 = vunpack.c.h.bf16 %v3874_v20  ;;  %v3540_v18 = vunpack.c.h.bf16 %v3890_v33  ;;  %v5057_v0 = vld [vmem:[%s4409_s20 + $0x3d8] sm:$0xff]  }
  0xfb   : > { %v2576_v31 = vadd.f32 %v2544_v9, %v2439_v23  ;;  %v2029_v41 = vadd.f32 %v1997_v11, %v1892_v17  ;;  %v1724_v40 = vmul.f32 %v4826_v36, %v3412_v24  ;;  %v3604_v30 = vunpack.c.h.bf16 %v3906_v54  ;;  %v5067_v24 = vld [vmem:[%s4409_s20 + $0x458] sm:$0xff]  }
  0xfc   : > { %2814 = vst.msk [vmem:[%s4535_s10 + $0x48] sm:$0xf] %vm2795_vm0, %v3227_v19  ;;  %v2408_v29 = vmul.f32 %v4887_v25, %v3731_v59  ;;  %v1619_v26 = vadd.f32 %v1587_v35, %v1482_v21  ;;  %v1861_v34 = vmul.f32 %v4833_v37, %v3476_v22  ;;  %v3668_v28 = vunpack.c.h.bf16 %v3922_v53 }
  0xfd   : > { %v2615_v20 = vmul.f32 %v4932_v5, %v2576_v31  ;;  %v2166_v33 = vadd.f32 %v2134_v2, %v2029_v41  ;;  %v2545_v44 = vmul.f32 %v4905_v39, %v3795_v7  ;;  %v1998_v54 = vmul.f32 %v4850_v55, %v3540_v18 }
  0xfe   : > { %v1756_v47 = vadd.f32 %v1724_v40, %v1619_v26  ;;  %v2135_v46 = vmul.f32 %v4861_v4, %v3604_v30  ;;  %v3732_v32 = vunpack.c.h.bf16 %v5010_v1  ;;  %v3287_v56 = vunpack.c.l.bf16 %v3827_v27  ;;  %v5051_v1 = vld [vmem:[%s4409_s20 + $0x358] sm:$0xff]  }
  0xff   : > { %v2654_v53 = vadd.f32 %v4945_v12, %v2615_v20  ;;  %v2303_v58 = vadd.f32 %v2271_v15, %v2166_v33  ;;  %v2272_v61 = vmul.f32 %v4873_v10, %v3668_v28  ;;  %v3351_v50 = vunpack.c.l.bf16 %v3843_v38 }
 0x100   : > { %v1893_v3 = vadd.f32 %v1861_v34, %v1756_v47  ;;  %v3796_v52 = vunpack.c.h.bf16 %v5016_v42  ;;  %v1483_v51 = vmul.f32 %v4814_v13, %v3287_v56  ;;  %v3415_v57 = vunpack.c.l.bf16 %v3859_v43 }
 0x101   : > { %v3228_v62 = vpack.c.bf16 %v2654_v53, %v2654_v53  ;;  %v2440_v8 = vadd.f32 %v2408_v29, %v2303_v58  ;;  %v1588_v9 = vmul.f32 %v4820_v45, %v3351_v50  ;;  %v3479_v11 = vunpack.c.l.bf16 %v3875_v48  ;;  %v3828_v58 = vld [vmem:[%s4409_s20 + $0x60] sm:$0xff]  }
 0x102   : > { %v2030_v2 = vadd.f32 %v1998_v54, %v1893_v3  ;;  %v1725_v16 = vmul.f32 %v4826_v36, %v3415_v57  ;;  %v3543_v6 = vunpack.c.l.bf16 %v3891_v60  ;;  %v3607_v59 = vunpack.c.l.bf16 %v5046_v49 }
 0x103   : > { %2815 = vst.msk [vmem:[%s4535_s10 + $0x4c] sm:$0xf] %vm2795_vm0, %v3228_v62  ;;  %v2577_v42 = vadd.f32 %v2545_v44, %v2440_v8  ;;  %v1620_v14 = vadd.f32 %v1588_v9, %v1483_v51  ;;  %v1862_v15 = vmul.f32 %v4833_v37, %v3479_v11  ;;  %v3671_v7 = vunpack.c.l.bf16 %v5051_v1  ;;  %v3860_v62 = vld [vmem:[%s4409_s20 + $0x160] sm:$0xff]  }
 0x104   : > { %v2167_v63 = vadd.f32 %v2135_v46, %v2030_v2  ;;  %v2409_v23 = vmul.f32 %v4887_v25, %v3732_v32  ;;  %v2546_v17 = vmul.f32 %v4905_v39, %v3796_v52  ;;  %v1999_v21 = vmul.f32 %v4850_v55, %v3543_v6  ;;  %v3876_v8 = vld [vmem:[%s4409_s20 + $0x1e0] sm:$0xff]  }
 0x105   : > { %v2616_v19 = vmul.f32 %v4932_v5, %v2577_v42  ;;  %v1757_v35 = vadd.f32 %v1725_v16, %v1620_v14  ;;  %v2136_v22 = vmul.f32 %v4861_v4, %v3607_v59  ;;  %v3735_v18 = vunpack.c.l.bf16 %v5057_v0  ;;  %v3892_v6 = vld [vmem:[%s4409_s20 + $0x260] sm:$0xff]  }
 0x106   : > { %v2304_v31 = vadd.f32 %v2272_v61, %v2167_v63  ;;  %v2273_v41 = vmul.f32 %v4873_v10, %v3671_v7  ;;  %v3288_v40 = vunpack.c.h.bf16 %v3827_v27  ;;  %v3352_v30 = vunpack.c.h.bf16 %v3843_v38 }
 0x107   : > { %v2655_v29 = vadd.f32 %v4945_v12, %v2616_v19  ;;  %v1894_v26 = vadd.f32 %v1862_v15, %v1757_v35  ;;  %v3799_v34 = vunpack.c.l.bf16 %v5067_v24  ;;  %v3416_v28 = vunpack.c.h.bf16 %v3859_v43  ;;  %v3908_v15 = vld [vmem:[%s4409_s20 + $0x2e0] sm:$0xff]  }
 0x108   : > { %v2441_v20 = vadd.f32 %v2409_v23, %v2304_v31  ;;  %v1484_v33 = vmul.f32 %v4814_v13, %v3288_v40  ;;  %v1589_v44 = vmul.f32 %v4820_v45, %v3352_v30  ;;  %v3480_v54 = vunpack.c.h.bf16 %v3875_v48  ;;  %v5104_v40 = vld [vmem:[%s4409_s20 + $0x3e0] sm:$0xff]  }
 0x109   : > { %v3229_v47 = vpack.c.bf16 %v2655_v29, %v2655_v29  ;;  %v2031_v46 = vadd.f32 %v1999_v21, %v1894_v26  ;;  %v1726_v27 = vmul.f32 %v4826_v36, %v3416_v28  ;;  %v3544_v38 = vunpack.c.h.bf16 %v3891_v60  ;;  %v3844_v60 = vld [vmem:[%s4409_s20 + $0xe0] sm:$0xff]  }
 0x10a   : > { %v2578_v32 = vadd.f32 %v2546_v17, %v2441_v20  ;;  %v1621_v56 = vadd.f32 %v1589_v44, %v1484_v33  ;;  %v1863_v53 = vmul.f32 %v4833_v37, %v3480_v54  ;;  %v3608_v43 = vunpack.c.h.bf16 %v5046_v49  ;;  %v3924_v17 = vld [vmem:[%s4409_s20 + $0x360] sm:$0xff]  }
 0x10b   : > { %2816 = vst.msk [vmem:[%s4535_s10 + $0x50] sm:$0xf] %vm2795_vm0, %v3229_v47  ;;  %v2168_v61 = vadd.f32 %v2136_v22, %v2031_v46  ;;  %v2410_v48 = vmul.f32 %v4887_v25, %v3735_v18  ;;  %v2547_v50 = vmul.f32 %v4905_v39, %v3799_v34  ;;  %v3672_v3 = vunpack.c.h.bf16 %v5051_v1  ;;  %v5110_v28 = vld [vmem:[%s4409_s20 + $0x460] sm:$0xff]  }
 0x10c   : > { %v2617_v52 = vmul.f32 %v4932_v5, %v2578_v32  ;;  %v1758_v51 = vadd.f32 %v1726_v27, %v1621_v56  ;;  %v2000_v57 = vmul.f32 %v4850_v55, %v3544_v38  ;;  %v3736_v49 = vunpack.c.h.bf16 %v5057_v0 }
 0x10d   : > { %v2305_v9 = vadd.f32 %v2273_v41, %v2168_v61  ;;  %v2137_v11 = vmul.f32 %v4861_v4, %v3608_v43  ;;  %v3800_v2 = vunpack.c.h.bf16 %v5067_v24  ;;  %v3291_v16 = vunpack.c.l.bf16 %v3828_v58 }
 0x10e   : > { %v2656_v1 = vadd.f32 %v4945_v12, %v2617_v52  ;;  %v1895_v59 = vadd.f32 %v1863_v53, %v1758_v51  ;;  %v2274_v42 = vmul.f32 %v4873_v10, %v3672_v3  ;;  %v3355_v14 = vunpack.c.l.bf16 %v3844_v60 }
 0x10f   : > { %v2442_v0 = vadd.f32 %v2410_v48, %v2305_v9  ;;  %v1485_v7 = vmul.f32 %v4814_v13, %v3291_v16  ;;  %v3419_v63 = vunpack.c.l.bf16 %v3860_v62  ;;  %v3483_v23 = vunpack.c.l.bf16 %v3876_v8  ;;  %v3829_v16 = vld [vmem:[%s4409_s20 + $0x68] sm:$0xff]  }
 0x110   : > { %v3230_v21 = vpack.c.bf16 %v2656_v1, %v2656_v1  ;;  %v2032_v24 = vadd.f32 %v2000_v57, %v1895_v59  ;;  %v1590_v19 = vmul.f32 %v4820_v45, %v3355_v14  ;;  %v3547_v35 = vunpack.c.l.bf16 %v3892_v6 }
 0x111   : > { %v2579_v22 = vadd.f32 %v2547_v50, %v2442_v0  ;;  %v2411_v18 = vmul.f32 %v4887_v25, %v3736_v49  ;;  %v1727_v31 = vmul.f32 %v4826_v36, %v3419_v63  ;;  %v3611_v41 = vunpack.c.l.bf16 %v3908_v15  ;;  %v3861_v0 = vld [vmem:[%s4409_s20 + $0x168] sm:$0xff]  }
 0x112   : > { %2817 = vst.msk [vmem:[%s4535_s10 + $0x54] sm:$0xf] %vm2795_vm0, %v3230_v21  ;;  %v2169_v30 = vadd.f32 %v2137_v11, %v2032_v24  ;;  %v1622_v29 = vadd.f32 %v1590_v19, %v1485_v7  ;;  %v1864_v26 = vmul.f32 %v4833_v37, %v3483_v23  ;;  %v3675_v34 = vunpack.c.l.bf16 %v3924_v17  ;;  %v3877_v24 = vld [vmem:[%s4409_s20 + $0x1e8] sm:$0xff]  }
 0x113   : > { %v2618_v20 = vmul.f32 %v4932_v5, %v2579_v22  ;;  %v2548_v33 = vmul.f32 %v4905_v39, %v3800_v2  ;;  %v2001_v44 = vmul.f32 %v4850_v55, %v3547_v35  ;;  %v2138_v54 = vmul.f32 %v4861_v4, %v3611_v41 }
 0x114   : > { %v2306_v47 = vadd.f32 %v2274_v42, %v2169_v30  ;;  %v1759_v46 = vadd.f32 %v1727_v31, %v1622_v29  ;;  %v3739_v27 = vunpack.c.l.bf16 %v5104_v40  ;;  %v3292_v38 = vunpack.c.h.bf16 %v3828_v58  ;;  %v3845_v42 = vld [vmem:[%s4409_s20 + $0xe8] sm:$0xff]  }
 0x115   : > { %v2657_v32 = vadd.f32 %v4945_v12, %v2618_v20  ;;  %v2275_v56 = vmul.f32 %v4873_v10, %v3675_v34  ;;  %v3803_v53 = vunpack.c.l.bf16 %v5110_v28  ;;  %v3356_v43 = vunpack.c.h.bf16 %v3844_v60  ;;  %v5140_v31 = vld [vmem:[%s4409_s20 + $0x2e8] sm:$0xff]  }
 0x116   : > { %v2443_v61 = vadd.f32 %v2411_v18, %v2306_v47  ;;  %v1896_v48 = vadd.f32 %v1864_v26, %v1759_v46  ;;  %v1486_v50 = vmul.f32 %v4814_v13, %v3292_v38  ;;  %v3420_v3 = vunpack.c.h.bf16 %v3860_v62  ;;  %v3893_v18 = vld [vmem:[%s4409_s20 + $0x268] sm:$0xff]  }
 0x117   : > { %v3231_v52 = vpack.c.bf16 %v2657_v32, %v2657_v32  ;;  %v1591_v51 = vmul.f32 %v4820_v45, %v3356_v43  ;;  %v3484_v57 = vunpack.c.h.bf16 %v3876_v8  ;;  %v3548_v58 = vunpack.c.h.bf16 %v3892_v6  ;;  %v5151_v38 = vld [vmem:[%s4409_s20 + $0x3e8] sm:$0xff]  }
 0x118   : > { %v2580_v49 = vadd.f32 %v2548_v33, %v2443_v61  ;;  %v2033_v9 = vadd.f32 %v2001_v44, %v1896_v48  ;;  %v1728_v11 = vmul.f32 %v4826_v36, %v3420_v3  ;;  %v3612_v2 = vunpack.c.h.bf16 %v3908_v15  ;;  %v5161_v3 = vld [vmem:[%s4409_s20 + $0x468] sm:$0xff]  }
 0x119   : > { %2818 = vst.msk [vmem:[%s4535_s10 + $0x58] sm:$0xf] %vm2795_vm0, %v3231_v52  ;;  %v2412_v60 = vmul.f32 %v4887_v25, %v3739_v27  ;;  %v1623_v1 = vadd.f32 %v1591_v51, %v1486_v50  ;;  %v1865_v62 = vmul.f32 %v4833_v37, %v3484_v57  ;;  %v3676_v59 = vunpack.c.h.bf16 %v3924_v17 }
 0x11a   : > { %v2619_v8 = vmul.f32 %v4932_v5, %v2580_v49  ;;  %v2170_v6 = vadd.f32 %v2138_v54, %v2033_v9  ;;  %v2549_v14 = vmul.f32 %v4905_v39, %v3803_v53  ;;  %v2002_v15 = vmul.f32 %v4850_v55, %v3548_v58 }
 0x11b   : > { %v1760_v7 = vadd.f32 %v1728_v11, %v1623_v1  ;;  %v2139_v63 = vmul.f32 %v4861_v4, %v3612_v2  ;;  %v3740_v23 = vunpack.c.h.bf16 %v5104_v40  ;;  %v3295_v21 = vunpack.c.l.bf16 %v3829_v16  ;;  %v5145_v40 = vld [vmem:[%s4409_s20 + $0x368] sm:$0xff]  }
 0x11c   : > { %v2658_v17 = vadd.f32 %v4945_v12, %v2619_v8  ;;  %v2307_v19 = vadd.f32 %v2275_v56, %v2170_v6  ;;  %v2276_v35 = vmul.f32 %v4873_v10, %v3676_v59  ;;  %v3359_v22 = vunpack.c.l.bf16 %v3845_v42 }
 0x11d   : > { %v1897_v41 = vadd.f32 %v1865_v62, %v1760_v7  ;;  %v3804_v30 = vunpack.c.h.bf16 %v5110_v28  ;;  %v1487_v29 = vmul.f32 %v4814_v13, %v3295_v21  ;;  %v3423_v26 = vunpack.c.l.bf16 %v3861_v0 }
 0x11e   : > { %v3232_v34 = vpack.c.bf16 %v2658_v17, %v2658_v17  ;;  %v2444_v20 = vadd.f32 %v2412_v60, %v2307_v19  ;;  %v1592_v33 = vmul.f32 %v4820_v45, %v3359_v22  ;;  %v3487_v44 = vunpack.c.l.bf16 %v3877_v24  ;;  %v3830_v19 = vld [vmem:[%s4409_s20 + $0x70] sm:$0xff]  }
 0x11f   : > { %v2034_v54 = vadd.f32 %v2002_v15, %v1897_v41  ;;  %v1729_v47 = vmul.f32 %v4826_v36, %v3423_v26  ;;  %v3551_v46 = vunpack.c.l.bf16 %v3893_v18  ;;  %v3615_v27 = vunpack.c.l.bf16 %v5140_v31 }
 0x120   : > { %2819 = vst.msk [vmem:[%s4535_s10 + $0x5c] sm:$0xf] %vm2795_vm0, %v3232_v34  ;;  %v2581_v28 = vadd.f32 %v2549_v14, %v2444_v20  ;;  %v1624_v32 = vadd.f32 %v1592_v33, %v1487_v29  ;;  %v1866_v56 = vmul.f32 %v4833_v37, %v3487_v44  ;;  %v3679_v53 = vunpack.c.l.bf16 %v5145_v40  ;;  %v3862_v34 = vld [vmem:[%s4409_s20 + $0x170] sm:$0xff]  }
 0x121   : > { %v2171_v43 = vadd.f32 %v2139_v63, %v2034_v54  ;;  %v2413_v61 = vmul.f32 %v4887_v25, %v3740_v23  ;;  %v2550_v48 = vmul.f32 %v4905_v39, %v3804_v30  ;;  %v2003_v50 = vmul.f32 %v4850_v55, %v3551_v46  ;;  %v3878_v20 = vld [vmem:[%s4409_s20 + $0x1f0] sm:$0xff]  }
 0x122   : > { %v2620_v52 = vmul.f32 %v4932_v5, %v2581_v28  ;;  %v1761_v51 = vadd.f32 %v1729_v47, %v1624_v32  ;;  %v2140_v57 = vmul.f32 %v4861_v4, %v3615_v27  ;;  %v3743_v58 = vunpack.c.l.bf16 %v5151_v38  ;;  %v3894_v46 = vld [vmem:[%s4409_s20 + $0x270] sm:$0xff]  }
 0x123   : > { %v2308_v49 = vadd.f32 %v2276_v35, %v2171_v43  ;;  %v2277_v9 = vmul.f32 %v4873_v10, %v3679_v53  ;;  %v3296_v11 = vunpack.c.h.bf16 %v3829_v16  ;;  %v3360_v2 = vunpack.c.h.bf16 %v3845_v42 }
 0x124   : > { %v2659_v60 = vadd.f32 %v4945_v12, %v2620_v52  ;;  %v1898_v1 = vadd.f32 %v1866_v56, %v1761_v51  ;;  %v3807_v62 = vunpack.c.l.bf16 %v5161_v3  ;;  %v3424_v59 = vunpack.c.h.bf16 %v3861_v0  ;;  %v3910_v56 = vld [vmem:[%s4409_s20 + $0x2f0] sm:$0xff]  }
 0x125   : > { %v2445_v8 = vadd.f32 %v2413_v61, %v2308_v49  ;;  %v1488_v6 = vmul.f32 %v4814_v13, %v3296_v11  ;;  %v1593_v14 = vmul.f32 %v4820_v45, %v3360_v2  ;;  %v3488_v15 = vunpack.c.h.bf16 %v3877_v24  ;;  %v5198_v11 = vld [vmem:[%s4409_s20 + $0x3f0] sm:$0xff]  }
 0x126   : > { %v3233_v7 = vpack.c.bf16 %v2659_v60, %v2659_v60  ;;  %v2035_v63 = vadd.f32 %v2003_v50, %v1898_v1  ;;  %v1730_v16 = vmul.f32 %v4826_v36, %v3424_v59  ;;  %v3552_v42 = vunpack.c.h.bf16 %v3893_v18  ;;  %v3846_v18 = vld [vmem:[%s4409_s20 + $0xf0] sm:$0xff]  }
 0x127   : > { %v2582_v23 = vadd.f32 %v2550_v48, %v2445_v8  ;;  %v1625_v21 = vadd.f32 %v1593_v14, %v1488_v6  ;;  %v1867_v17 = vmul.f32 %v4833_v37, %v3488_v15  ;;  %v3616_v0 = vunpack.c.h.bf16 %v5140_v31  ;;  %v3926_v48 = vld [vmem:[%s4409_s20 + $0x370] sm:$0xff]  }
 0x128   : > { %2820 = vst.msk [vmem:[%s4535_s10 + $0x60] sm:$0xf] %vm2795_vm0, %v3233_v7  ;;  %v2172_v35 = vadd.f32 %v2140_v57, %v2035_v63  ;;  %v2414_v24 = vmul.f32 %v4887_v25, %v3743_v58  ;;  %v2551_v22 = vmul.f32 %v4905_v39, %v3807_v62  ;;  %v3680_v41 = vunpack.c.h.bf16 %v5145_v40  ;;  %v5204_v59 = vld [vmem:[%s4409_s20 + $0x470] sm:$0xff]  }
 0x129   : > { %v2621_v30 = vmul.f32 %v4932_v5, %v2582_v23  ;;  %v1762_v29 = vadd.f32 %v1730_v16, %v1625_v21  ;;  %v2004_v26 = vmul.f32 %v4850_v55, %v3552_v42  ;;  %v3744_v31 = vunpack.c.h.bf16 %v5151_v38 }
 0x12a   : > { %v2309_v33 = vadd.f32 %v2277_v9, %v2172_v35  ;;  %v2141_v44 = vmul.f32 %v4861_v4, %v3616_v0  ;;  %v3808_v54 = vunpack.c.h.bf16 %v5161_v3  ;;  %v3299_v47 = vunpack.c.l.bf16 %v3830_v19 }
 0x12b   : > { %v2660_v40 = vadd.f32 %v4945_v12, %v2621_v30  ;;  %v1899_v27 = vadd.f32 %v1867_v17, %v1762_v29  ;;  %v2278_v28 = vmul.f32 %v4873_v10, %v3680_v41  ;;  %v3363_v32 = vunpack.c.l.bf16 %v3846_v18 }
 0x12c   : > { %v2446_v38 = vadd.f32 %v2414_v24, %v2309_v33  ;;  %v1489_v53 = vmul.f32 %v4814_v13, %v3299_v47  ;;  %v3427_v43 = vunpack.c.l.bf16 %v3862_v34  ;;  %v3491_v61 = vunpack.c.l.bf16 %v3878_v20  ;;  %v5218_v47 = vld [vmem:[%s4409_s20 + $0x78] sm:$0xff]  }
 0x12d   : > { %v3234_v50 = vpack.c.bf16 %v2660_v40, %v2660_v40  ;;  %v2036_v3 = vadd.f32 %v2004_v26, %v1899_v27  ;;  %v1594_v52 = vmul.f32 %v4820_v45, %v3363_v32  ;;  %v3555_v51 = vunpack.c.l.bf16 %v3894_v46 }
 0x12e   : > { %v2583_v57 = vadd.f32 %v2551_v22, %v2446_v38  ;;  %v2415_v58 = vmul.f32 %v4887_v25, %v3744_v31  ;;  %v1731_v49 = vmul.f32 %v4826_v36, %v3427_v43  ;;  %v3619_v9 = vunpack.c.l.bf16 %v3910_v56 }
 0x12f   : > { %2821 = vst.msk [vmem:[%s4535_s10 + $0x64] sm:$0xf] %vm2795_vm0, %v3234_v50  ;;  %v2173_v2 = vadd.f32 %v2141_v44, %v2036_v3  ;;  %v1626_v60 = vadd.f32 %v1594_v52, %v1489_v53  ;;  %v1868_v1 = vmul.f32 %v4833_v37, %v3491_v61  ;;  %v3683_v62 = vunpack.c.l.bf16 %v3926_v48  ;;  %v3879_v53 = vld [vmem:[%s4409_s20 + $0x1f8] sm:$0xff]  }
 0x130   : > { %v2622_v8 = vmul.f32 %v4932_v5, %v2583_v57  ;;  %v2552_v6 = vmul.f32 %v4905_v39, %v3808_v54  ;;  %v2005_v14 = vmul.f32 %v4850_v55, %v3555_v51  ;;  %v2142_v15 = vmul.f32 %v4861_v4, %v3619_v9  ;;  %v5239_v3 = vld [vmem:[%s4409_s20 + $0x278] sm:$0xff]   ;;  %v3997_v51 = vld [vmem:[%s5320_s1] ss:$0 sm:$0xff] }
 0x131   : > { %v2310_v7 = vadd.f32 %v2278_v28, %v2173_v2  ;;  %v1763_v63 = vadd.f32 %v1731_v49, %v1626_v60  ;;  %v3747_v16 = vunpack.c.l.bf16 %v5198_v11  ;;  %v3300_v42 = vunpack.c.h.bf16 %v3830_v19  ;;  %v3863_v28 = vld [vmem:[%s4409_s20 + $0x178] sm:$0xff]  }
 0x132   : > { %v2661_v23 = vadd.f32 %v4945_v12, %v2622_v8  ;;  %v2279_v21 = vmul.f32 %v4873_v10, %v3683_v62  ;;  %v3811_v17 = vunpack.c.l.bf16 %v5204_v59  ;;  %v3364_v0 = vunpack.c.h.bf16 %v3846_v18  ;;  %v5249_v49 = vld [vmem:[%s4409_s20 + $0x378] sm:$0xff]   ;;  %v3999_v62 = vld [vmem:[%s5320_s1 + $0x2] ss:$0 sm:$0xff] }
 0x133   : > { %v2447_v35 = vadd.f32 %v2415_v58, %v2310_v7  ;;  %v1900_v24 = vadd.f32 %v1868_v1, %v1763_v63  ;;  %v1490_v22 = vmul.f32 %v4814_v13, %v3300_v42  ;;  %v3428_v41 = vunpack.c.h.bf16 %v3862_v34  ;;  %v4000_v63 = vld [vmem:[%s5320_s1 + $0x3] ss:$0 sm:$0xff] }
 0x134   : > { %v3235_v30 = vpack.c.bf16 %v2661_v23, %v2661_v23  ;;  %v1595_v29 = vmul.f32 %v4820_v45, %v3364_v0  ;;  %v3492_v26 = vunpack.c.h.bf16 %v3878_v20  ;;  %v3556_v19 = vunpack.c.h.bf16 %v3894_v46  ;;  %v5225_v45 = vld [vmem:[%s4409_s20 + $0xf8] sm:$0xff]   ;;  %v4001_v0 = vld [vmem:[%s5320_s1 + $0x4] ss:$0 sm:$0xff] }
 0x135   : > { %v2584_v31 = vadd.f32 %v2552_v6, %v2447_v35  ;;  %v2037_v33 = vadd.f32 %v2005_v14, %v1900_v24  ;;  %v1732_v44 = vmul.f32 %v4826_v36, %v3428_v41  ;;  %v3620_v54 = vunpack.c.h.bf16 %v3910_v56  ;;  %v5260_v14 = vld [vmem:[%s4409_s20 + $0x3f8] sm:$0xff]  }
 0x136   : > { %2822 = vst.msk [vmem:[%s4535_s10 + $0x68] sm:$0xf] %vm2795_vm0, %v3235_v30  ;;  %v2416_v13 = vmul.f32 %v4887_v25, %v3747_v16  ;;  %v1627_v18 = vadd.f32 %v1595_v29, %v1490_v22  ;;  %v1869_v34 = vmul.f32 %v4833_v37, %v3492_v26  ;;  %v3684_v40 = vunpack.c.h.bf16 %v3926_v48  ;;  %v3959_v24 = vld [vmem:[%s4409_s20 + $0x478] sm:$0xff]   ;;  %v4002_v30 = vld [vmem:[%s5320_s1 + $0x5] ss:$0 sm:$0xff] }
 0x137   : > { %v2623_v20 = vmul.f32 %v4932_v5, %v2584_v31  ;;  %v2174_v46 = vadd.f32 %v2142_v15, %v2037_v33  ;;  %v2553_v36 = vmul.f32 %v4905_v39, %v3811_v17  ;;  %v2006_v27 = vmul.f32 %v4850_v55, %v3556_v19  ;;  %v5242_v55 = vld [vmem:[%s4409_s20 + $0x2f8] sm:$0xff]  }
 0x138   : > { %v1764_v32 = vadd.f32 %v1732_v44, %v1627_v18  ;;  %v2143_v56 = vmul.f32 %v4861_v4, %v3620_v54  ;;  %v3748_v38 = vunpack.c.h.bf16 %v5198_v11  ;;  %v3303_v37 = vunpack.c.l.bf16 %v5218_v47  ;;  %v3998_v11 = vld [vmem:[%s5320_s1 + $0x1] ss:$0 sm:$0xff] }
 0x139   : > { %v2662_v43 = vadd.f32 %v4945_v12, %v2623_v20  ;;  %v2311_v61 = vadd.f32 %v2279_v21, %v2174_v46  ;;  %v2280_v48 = vmul.f32 %v4873_v10, %v3684_v40  ;;  %v3367_v50 = vunpack.c.l.bf16 %v5225_v45 }
 0x13a   : > { %v1901_v52 = vadd.f32 %v1869_v34, %v1764_v32  ;;  %v3812_v4 = vunpack.c.h.bf16 %v5204_v59  ;;  %v1491_v57 = vmul.f32 %v3997_v51, %v3303_v37  ;;  %v3431_v58 = vunpack.c.l.bf16 %v3863_v28 }
 0x13b   : > { %v3236_v10 = vpack.c.bf16 %v2662_v43, %v2662_v43  ;;  %v2448_v9 = vadd.f32 %v2416_v13, %v2311_v61  ;;  %v1596_v2 = vmul.f32 %v3998_v11, %v3367_v50  ;;  %v3495_v60 = vunpack.c.l.bf16 %v3879_v53 }
 0x13c   : > { %v2038_v1 = vadd.f32 %v2006_v27, %v1901_v52  ;;  %v1733_v59 = vmul.f32 %v3999_v62, %v3431_v58  ;;  %v3559_v8 = vunpack.c.l.bf16 %v5239_v3  ;;  %v3623_v6 = vunpack.c.l.bf16 %v5242_v55 }
 0x13d   : > { %2823 = vst.msk [vmem:[%s4535_s10 + $0x6c] sm:$0xf] %vm2795_vm0, %v3236_v10  ;;  %v2585_v15 = vadd.f32 %v2553_v36, %v2448_v9  ;;  %v1628_v7 = vadd.f32 %v1596_v2, %v1491_v57  ;;  %v1870_v16 = vmul.f32 %v4000_v63, %v3495_v60  ;;  %v3687_v42 = vunpack.c.l.bf16 %v5249_v49 }
 0x13e   : > { %v2175_v23 = vadd.f32 %v2143_v56, %v2038_v1  ;;  %v2417_v21 = vmul.f32 %v4887_v25, %v3748_v38  ;;  %v2554_v17 = vmul.f32 %v4905_v39, %v3812_v4  ;;  %v2007_v35 = vmul.f32 %v4001_v0, %v3559_v8  ;;  %v4003_v25 = vld [vmem:[%s5320_s1 + $0x6] ss:$0 sm:$0xff] }
 0x13f   : > { %v2624_v22 = vmul.f32 %v4932_v5, %v2585_v15  ;;  %v1765_v41 = vadd.f32 %v1733_v59, %v1628_v7  ;;  %v2144_v29 = vmul.f32 %v4002_v30, %v3623_v6  ;;  %v3751_v26 = vunpack.c.l.bf16 %v5260_v14 }
 0x140   : > { %v2312_v19 = vadd.f32 %v2280_v48, %v2175_v23  ;;  %v2281_v39 = vmul.f32 %v4003_v25, %v3687_v42  ;;  %v3304_v31 = vunpack.c.h.bf16 %v5218_v47  ;;  %v3368_v33 = vunpack.c.h.bf16 %v5225_v45 }
 0x141   : > { %v2663_v44 = vadd.f32 %v4945_v12, %v2624_v22  ;;  %v1902_v54 = vadd.f32 %v1870_v16, %v1765_v41  ;;  %v3815_v13 = vunpack.c.l.bf16 %v3959_v24  ;;  %v3432_v18 = vunpack.c.h.bf16 %v3863_v28  ;;  %v4004_v28 = vld [vmem:[%s5320_s1 + $0x7] ss:$0 sm:$0xff] }
 0x142   : > { %v2449_v34 = vadd.f32 %v2417_v21, %v2312_v19  ;;  %v1492_v40 = vmul.f32 %v3997_v51, %v3304_v31  ;;  %v1597_v20 = vmul.f32 %v3998_v11, %v3368_v33  ;;  %v3496_v46 = vunpack.c.h.bf16 %v3879_v53 }
 0x143   : > { %v3237_v36 = vpack.c.bf16 %v2663_v44, %v2663_v44  ;;  %v2039_v27 = vadd.f32 %v2007_v35, %v1902_v54  ;;  %v1734_v32 = vmul.f32 %v3999_v62, %v3432_v18  ;;  %v3560_v56 = vunpack.c.h.bf16 %v5239_v3 }
 0x144   : > { %v2586_v38 = vadd.f32 %v2554_v17, %v2449_v34  ;;  %v1629_v37 = vadd.f32 %v1597_v20, %v1492_v40  ;;  %v1871_v47 = vmul.f32 %v4000_v63, %v3496_v46  ;;  %v3624_v45 = vunpack.c.h.bf16 %v5242_v55  ;;  %v4005_v55 = vld [vmem:[%s5320_s1 + $0x8] ss:$0 sm:$0xff] }
 0x145   : > { %2824 = vst.msk [vmem:[%s4535_s10 + $0x70] sm:$0xf] %vm2795_vm0, %v3237_v36  ;;  %v2176_v43 = vadd.f32 %v2144_v29, %v2039_v27  ;;  %v2418_v61 = vmul.f32 %v4004_v28, %v3751_v26  ;;  %v2008_v50 = vmul.f32 %v4001_v0, %v3560_v56  ;;  %v3688_v3 = vunpack.c.h.bf16 %v5249_v49 }
 0x146   : > { %v2625_v53 = vmul.f32 %v4932_v5, %v2586_v38  ;;  %v1766_v48 = vadd.f32 %v1734_v32, %v1629_v37  ;;  %v2555_v4 = vmul.f32 %v4005_v55, %v3815_v13  ;;  %v2145_v58 = vmul.f32 %v4002_v30, %v3624_v45 }
 0x147   : > { %v2313_v52 = vadd.f32 %v2281_v39, %v2176_v43  ;;  %v3752_v10 = vunpack.c.h.bf16 %v5260_v14  ;;  %v2282_v60 = vmul.f32 %v4003_v25, %v3688_v3  ;;  %v3816_v1 = vunpack.c.h.bf16 %v3959_v24 }
 0x148   : > { %v2664_v51 = vadd.f32 %v4945_v12, %v2625_v53  ;;  %v1903_v57 = vadd.f32 %v1871_v47, %v1766_v48 }
 0x149   : > { %v2450_v9 = vadd.f32 %v2418_v61, %v2313_v52  ;;  %v2419_v59 = vmul.f32 %v4004_v28, %v3752_v10  ;;  %v2556_v15 = vmul.f32 %v4005_v55, %v3816_v1 }
 0x14a   : > { %v3238_v11 = vpack.c.bf16 %v2664_v51, %v2664_v51  ;;  %v2040_v2 = vadd.f32 %v2008_v50, %v1903_v57 }
 0x14b   : > { %v2587_v49 = vadd.f32 %v2555_v4, %v2450_v9 }
 0x14c   : > { %2825 = vst.msk [vmem:[%s4535_s10 + $0x74] sm:$0xf] %vm2795_vm0, %v3238_v11  ;;  %v2177_v62 = vadd.f32 %v2145_v58, %v2040_v2 }
 0x14d   : > { %v2626_v8 = vmul.f32 %v4932_v5, %v2587_v49 }
 0x14e   : > { %v2314_v6 = vadd.f32 %v2282_v60, %v2177_v62 }
 0x14f   : > { %v2665_v7 = vadd.f32 %v4945_v12, %v2626_v8 }
 0x150   : > { %v2451_v63 = vadd.f32 %v2419_v59, %v2314_v6 }
 0x151   : > { %v3239_v14 = vpack.c.bf16 %v2665_v7, %v2665_v7 }
 0x152   : > { %v2588_v16 = vadd.f32 %v2556_v15, %v2451_v63 }
 0x153   : > { %2826 = vst.msk [vmem:[%s4535_s10 + $0x78] sm:$0xf] %vm2795_vm0, %v3239_v14 }
 0x154   : > { %v2627_v42 = vmul.f32 %v4932_v5, %v2588_v16 }
 0x156   : > { %v2666_v23 = vadd.f32 %v4945_v12, %v2627_v42 }
 0x158   : > { %v3240_v21 = vpack.c.bf16 %v2666_v23, %v2666_v23 }
 0x15a   : > { %2827 = vst.msk [vmem:[%s4535_s10 + $0x7c] sm:$0xf] %vm2795_vm0, %v3240_v21 }
 0x15b PF: > { %p11_p9 = scmp.ge.s32.totalorder %s4072_s19, 6   ;;  %s5324_s15 = smov %s4024_s16 }
 0x15c   : > { %s5325_s16 = smov %s4081_s22  ;;  %s5326_s17 = smov %s4072_s19 }
 0x15d   :  { %13 = sbr.rel (!%p11_p9) target bundleno = 2 (0x2), region = 128 }

</bundles_post_ra>
